<compile_context>
chip_gen: v6e
topology: v6e:2x2x1
jax: 0.10.0
libtpu: 0.0.40
codegen_flags: <defaults>
</compile_context>

<pallas_src>
import jax
import jax.numpy as jnp
from jax.experimental import pallas as pl
from jax.experimental.pallas import tpu as pltpu

IN_FEATURES = 28 * 28          # 784 (multiple of 8; legal as a full-array last dim)
HIDDEN = 512
OUT_FEATURES = 10
OUT_PAD = 128                  # lane-dense output width
MAX_TILE_B = 512               # amortizes the ~0.35 us per-grid-step overhead
_STEP_OVERHEAD_ROWS = 192      # ~0.35 us expressed in row-equivalents of MXU work


def _round_up(n, m):
    return ((n + m - 1) // m) * m


def _choose_batch_tile(batch):
    """Pick (tile_b, b_pad) minimizing padded work + per-step overhead.

    Also guarantees >= 2 grid steps for moderately large batches so both
    v7x TensorCores get work (no cost on single-TC v5e/v6e beyond one step).
    """
    best = None
    for t in (8, 64, 128, 256, MAX_TILE_B):
        steps = -(-batch // t)                       # ceil
        cost = steps * t + _STEP_OVERHEAD_ROWS * steps
        if best is None or cost < best[0]:
            best = (cost, t, steps)
    _, tile_b, steps = best
    if steps == 1 and batch > 128:
        # v7x megacore: split into two batch tiles so both cores are busy.
        tile_b = _round_up(-(-batch // 2), 8)
        steps = 2
    return tile_b, tile_b * steps


def mlp_kernel(x_ref, w1_ref, b1_ref, w2_ref, b2_ref, w3_ref, b3_ref, o_ref):
    # Three MXU matmuls (bf16 in, f32 accumulate) + VPU bias-add / ReLU, fused.
    x = x_ref[...]                                                       # (TB, 784) bf16
    h1 = jnp.dot(x, w1_ref[...], preferred_element_type=jnp.float32) + b1_ref[...]
    h1 = jnp.maximum(h1, 0.0).astype(jnp.bfloat16)                       # (TB, 512)
    h2 = jnp.dot(h1, w2_ref[...], preferred_element_type=jnp.float32) + b2_ref[...]
    h2 = jnp.maximum(h2, 0.0).astype(jnp.bfloat16)                       # (TB, 512)
    logits = jnp.dot(h2, w3_ref[...], preferred_element_type=jnp.float32) + b3_ref[...]
    o_ref[...] = logits.astype(o_ref.dtype)                              # (TB, 128)


def prepare_params(params):
    """One-time weight prep (pad / cast) hoisted out of the per-call path."""
    w1, b1, w2, b2, w3, b3 = params
    w1_p = w1.astype(jnp.bfloat16)                                       # (784, 512)
    w2_p = w2.astype(jnp.bfloat16)                                       # (512, 512)
    w3_p = jnp.pad(w3, ((0, 0), (0, OUT_PAD - OUT_FEATURES))).astype(jnp.bfloat16)
    b3_p = jnp.pad(b3, ((0, 0), (0, OUT_PAD - OUT_FEATURES)))            # f32 (1, 128)
    return (w1_p, b1, w2_p, b2, w3_p, b3_p)


def _mlp_forward_impl(x_nchw, prepared):
    w1_p, b1, w2_p, b2, w3_p, b3_p = prepared
    batch = x_nchw.shape[0]
    tile_b, b_pad = _choose_batch_tile(batch)

    # nn.Flatten + bf16 cast BEFORE padding; only the batch axis is padded.
    x_flat = x_nchw.reshape(batch, -1).astype(jnp.bfloat16)
    assert x_flat.shape[1] == IN_FEATURES
    x_p = jnp.pad(x_flat, ((0, b_pad - batch), (0, 0)))                  # (b_pad, 784) bf16

    grid = (b_pad // tile_b,)

    out = pl.pallas_call(
        mlp_kernel,
        out_shape=jax.ShapeDtypeStruct((b_pad, OUT_PAD), jnp.float32),
        grid=grid,
        in_specs=[
            # Activations: tiled along the batch grid axis (software pipelined).
            pl.BlockSpec((tile_b, IN_FEATURES), lambda i: (i, 0)),
            # Weights / biases: constant block index -> DMA'd once, VMEM-resident
            # across all grid steps (footprint ~3 MiB even double-buffered).
            pl.BlockSpec((IN_FEATURES, HIDDEN), lambda i: (0, 0)),
            pl.BlockSpec((1, HIDDEN), lambda i: (0, 0)),
            pl.BlockSpec((HIDDEN, HIDDEN), lambda i: (0, 0)),
            pl.BlockSpec((1, HIDDEN), lambda i: (0, 0)),
            pl.BlockSpec((HIDDEN, OUT_PAD), lambda i: (0, 0)),
            pl.BlockSpec((1, OUT_PAD), lambda i: (0, 0)),
        ],
        out_specs=pl.BlockSpec((tile_b, OUT_PAD), lambda i: (i, 0)),
        compiler_params=pltpu.CompilerParams(
            dimension_semantics=("parallel",),  # megacore sharding on v7x
        ),
    )(x_p, w1_p, b1, w2_p, b2, w3_p, b3_p)

    # Strip batch/output-lane padding outside the kernel.
    return out[:batch, :OUT_FEATURES]


mlp_forward = jax.jit(_mlp_forward_impl)


def init_params(key):
    # Deterministic init (Kaiming-uniform-ish, like PyTorch Linear defaults).
    k1, k2, k3, k4, k5, k6 = jax.random.split(key, 6)

    def linear_init(kw, kb, fan_in, fan_out):
        bound = 1.0 / jnp.sqrt(float(fan_in))
        w = jax.random.uniform(kw, (fan_in, fan_out), jnp.float32, -bound, bound)
        b = jax.random.uniform(kb, (1, fan_out), jnp.float32, -bound, bound)
        return w, b

    w1, b1 = linear_init(k1, k2, IN_FEATURES, HIDDEN)
    w2, b2 = linear_init(k3, k4, HIDDEN, HIDDEN)
    w3, b3 = linear_init(k5, k6, HIDDEN, OUT_FEATURES)
    return (w1, b1, w2, b2, w3, b3)


def reference_forward(x_nchw, params):
    # Pure-JAX reference emulating the kernel's bf16 storage / f32 accumulation.
    w1, b1, w2, b2, w3, b3 = params
    bf = lambda a: a.astype(jnp.bfloat16).astype(jnp.float32)
    x = bf(x_nchw.reshape(x_nchw.shape[0], -1).astype(jnp.float32))
    h1 = bf(jnp.maximum(x @ bf(w1) + b1, 0.0))
    h2 = bf(jnp.maximum(h1 @ bf(w2) + b2, 0.0))
    return h2 @ bf(w3) + b3


if __name__ == "__main__":
    key = jax.random.PRNGKey(0)
    k_x, k_p = jax.random.split(key)

    batch = 2
    x = jax.random.normal(k_x, (batch, 1, 28, 28), jnp.float32)  # NCHW, MNIST-like
    params = init_params(k_p)
    prepared = prepare_params(params)    # one-time weight pad/cast

    logits = mlp_forward(x, prepared)
    logits = jax.block_until_ready(logits)

    ref = reference_forward(x, params)
    assert logits.shape == (batch, OUT_FEATURES)
    # bf16 storage -> loosened tolerance vs. the bf16-emulating reference.
    assert jnp.allclose(logits, ref, atol=1e-2, rtol=1e-2)

    print("KERNEL_OK")
</pallas_src>

<mosaic_0001>
module attributes {stable_mosaic.version = 11 : i64} {
  func.func @mlp_kernel(%arg0: i32, %arg1: memref<8x784xbf16, #tpu.memory_space<vmem>>, %arg2: memref<784x512xbf16, #tpu.memory_space<vmem>>, %arg3: memref<1x512xf32, #tpu.memory_space<vmem>>, %arg4: memref<512x512xbf16, #tpu.memory_space<vmem>>, %arg5: memref<1x512xf32, #tpu.memory_space<vmem>>, %arg6: memref<512x128xbf16, #tpu.memory_space<vmem>>, %arg7: memref<1x128xf32, #tpu.memory_space<vmem>>, %arg8: memref<8x128xf32, #tpu.memory_space<vmem>>) attributes {dimension_semantics = [#tpu.dimension_semantics<parallel>], iteration_bounds = array<i64: 1>, scalar_prefetch = 0 : i64, scratch_operands = 0 : i64, tpu.core_type = #tpu.core_type<tc>, window_params = [{transform_indices = @transform_0, window_bounds = array<i64: 8, 784>}, {pipeline_mode = #tpu.pipeline_mode<synchronous>, transform_indices = @transform_1, window_bounds = array<i64: 784, 512>}, {pipeline_mode = #tpu.pipeline_mode<synchronous>, transform_indices = @transform_2, window_bounds = array<i64: 1, 512>}, {pipeline_mode = #tpu.pipeline_mode<synchronous>, transform_indices = @transform_3, window_bounds = array<i64: 512, 512>}, {pipeline_mode = #tpu.pipeline_mode<synchronous>, transform_indices = @transform_4, window_bounds = array<i64: 1, 512>}, {pipeline_mode = #tpu.pipeline_mode<synchronous>, transform_indices = @transform_5, window_bounds = array<i64: 512, 128>}, {pipeline_mode = #tpu.pipeline_mode<synchronous>, transform_indices = @transform_6, window_bounds = array<i64: 1, 128>}, {transform_indices = @transform_7, window_bounds = array<i64: 8, 128>}]} {
    %c0 = arith.constant 0 : index
    %c0_0 = arith.constant 0 : index
    %0 = vector.load %arg1[%c0, %c0_0] : memref<8x784xbf16, #tpu.memory_space<vmem>>, vector<8x784xbf16>
    %c0_1 = arith.constant 0 : index
    %c0_2 = arith.constant 0 : index
    %1 = vector.load %arg2[%c0_1, %c0_2] : memref<784x512xbf16, #tpu.memory_space<vmem>>, vector<784x512xbf16>
    %cst = arith.constant dense<0.000000e+00> : vector<8x512xf32>
    %2 = tpu.matmul %0, %1, %cst {dimension_numbers = #tpu.dot_dimension_numbers<[1], [0], [0], [1], [0, 0, 1, 1], [], []>} : vector<8x784xbf16>, vector<784x512xbf16>, vector<8x512xf32> -> vector<8x512xf32>
    %c0_3 = arith.constant 0 : index
    %c0_4 = arith.constant 0 : index
    %3 = vector.load %arg3[%c0_3, %c0_4] : memref<1x512xf32, #tpu.memory_space<vmem>>, vector<1x512xf32>
    %4 = vector.broadcast %3 : vector<1x512xf32> to vector<8x512xf32>
    %5 = arith.addf %2, %4 : vector<8x512xf32>
    %cst_5 = arith.constant 0.000000e+00 : f32
    %6 = vector.broadcast %cst_5 : f32 to vector<8x512xf32>
    %7 = arith.maximumf %5, %6 : vector<8x512xf32>
    %8 = arith.truncf %7 : vector<8x512xf32> to vector<8x512xbf16>
    %c0_6 = arith.constant 0 : index
    %c0_7 = arith.constant 0 : index
    %9 = vector.load %arg4[%c0_6, %c0_7] : memref<512x512xbf16, #tpu.memory_space<vmem>>, vector<512x512xbf16>
    %cst_8 = arith.constant dense<0.000000e+00> : vector<8x512xf32>
    %10 = tpu.matmul %8, %9, %cst_8 {dimension_numbers = #tpu.dot_dimension_numbers<[1], [0], [0], [1], [0, 0, 1, 1], [], []>} : vector<8x512xbf16>, vector<512x512xbf16>, vector<8x512xf32> -> vector<8x512xf32>
    %c0_9 = arith.constant 0 : index
    %c0_10 = arith.constant 0 : index
    %11 = vector.load %arg5[%c0_9, %c0_10] : memref<1x512xf32, #tpu.memory_space<vmem>>, vector<1x512xf32>
    %12 = vector.broadcast %11 : vector<1x512xf32> to vector<8x512xf32>
    %13 = arith.addf %10, %12 : vector<8x512xf32>
    %cst_11 = arith.constant 0.000000e+00 : f32
    %14 = vector.broadcast %cst_11 : f32 to vector<8x512xf32>
    %15 = arith.maximumf %13, %14 : vector<8x512xf32>
    %16 = arith.truncf %15 : vector<8x512xf32> to vector<8x512xbf16>
    %c0_12 = arith.constant 0 : index
    %c0_13 = arith.constant 0 : index
    %17 = vector.load %arg6[%c0_12, %c0_13] : memref<512x128xbf16, #tpu.memory_space<vmem>>, vector<512x128xbf16>
    %cst_14 = arith.constant dense<0.000000e+00> : vector<8x128xf32>
    %18 = tpu.matmul %16, %17, %cst_14 {dimension_numbers = #tpu.dot_dimension_numbers<[1], [0], [0], [1], [0, 0, 1, 1], [], []>} : vector<8x512xbf16>, vector<512x128xbf16>, vector<8x128xf32> -> vector<8x128xf32>
    %c0_15 = arith.constant 0 : index
    %c0_16 = arith.constant 0 : index
    %19 = vector.load %arg7[%c0_15, %c0_16] : memref<1x128xf32, #tpu.memory_space<vmem>>, vector<1x128xf32>
    %20 = vector.broadcast %19 : vector<1x128xf32> to vector<8x128xf32>
    %21 = arith.addf %18, %20 : vector<8x128xf32>
    %c0_17 = arith.constant 0 : index
    %c0_18 = arith.constant 0 : index
    %22 = vector.load %arg8[%c0_17, %c0_18] : memref<8x128xf32, #tpu.memory_space<vmem>>, vector<8x128xf32>
    tpu.vector_store %arg8[%c0_17, %c0_18], %21 {strides = array<i32>} : memref<8x128xf32, #tpu.memory_space<vmem>>, vector<8x128xf32>,
    return
  }
  func.func @transform_0(%arg0: i32) -> (i32, i32) {
    %c0_i32 = arith.constant 0 : i32
    %c0_i32_0 = arith.constant 0 : i32
    return %arg0, %c0_i32 : i32, i32
  }
  func.func @transform_1(%arg0: i32) -> (i32, i32) {
    %c0_i32 = arith.constant 0 : i32
    %c0_i32_0 = arith.constant 0 : i32
    %c0_i32_1 = arith.constant 0 : i32
    return %c0_i32, %c0_i32_0 : i32, i32
  }
  func.func @transform_2(%arg0: i32) -> (i32, i32) {
    %c0_i32 = arith.constant 0 : i32
    %c0_i32_0 = arith.constant 0 : i32
    %c0_i32_1 = arith.constant 0 : i32
    return %c0_i32, %c0_i32_0 : i32, i32
  }
  func.func @transform_3(%arg0: i32) -> (i32, i32) {
    %c0_i32 = arith.constant 0 : i32
    %c0_i32_0 = arith.constant 0 : i32
    %c0_i32_1 = arith.constant 0 : i32
    return %c0_i32, %c0_i32_0 : i32, i32
  }
  func.func @transform_4(%arg0: i32) -> (i32, i32) {
    %c0_i32 = arith.constant 0 : i32
    %c0_i32_0 = arith.constant 0 : i32
    %c0_i32_1 = arith.constant 0 : i32
    return %c0_i32, %c0_i32_0 : i32, i32
  }
  func.func @transform_5(%arg0: i32) -> (i32, i32) {
    %c0_i32 = arith.constant 0 : i32
    %c0_i32_0 = arith.constant 0 : i32
    %c0_i32_1 = arith.constant 0 : i32
    return %c0_i32, %c0_i32_0 : i32, i32
  }
  func.func @transform_6(%arg0: i32) -> (i32, i32) {
    %c0_i32 = arith.constant 0 : i32
    %c0_i32_0 = arith.constant 0 : i32
    %c0_i32_1 = arith.constant 0 : i32
    return %c0_i32, %c0_i32_0 : i32, i32
  }
  func.func @transform_7(%arg0: i32) -> (i32, i32) {
    %c0_i32 = arith.constant 0 : i32
    %c0_i32_0 = arith.constant 0 : i32
    return %arg0, %c0_i32 : i32, i32
  }
}

</mosaic_0001>

<bundles_post_ra>
// kernel: _mlp_forward_impl.1
= control target key start
LH: loop header
LB: loop body
LE: loop exit
PB: predicated region body
PF: predicated region fallthrough
CT: control target
= control target key end

     0   :  { %12 = vsyncpa [#allocation3], 0  ;;  %s4114_s0 = inlined_call_operand.vmem [shape: bf16[8,784], index: 0, kind: input, shape index: {}]   ;;  %s4115_s1 = inlined_call_operand.hbm [shape: bf16[784,512], index: 1, kind: input, shape index: {}]   ;;  %s4116_s2 = inlined_call_operand.vmem [shape: f32[1,512], index: 2, kind: input, shape index: {}]   ;;  %s4117_s3 = inlined_call_operand.hbm [shape: bf16[512,512], index: 3, kind: input, shape index: {}]   ;;  %s4118_s4 = inlined_call_operand.vmem [shape: f32[1,512], index: 4, kind: input, shape index: {}]   ;;  %s4119_s5 = inlined_call_operand.hbm [shape: bf16[512,128], index: 5, kind: input, shape index: {}]   ;;  %s4120_s6 = inlined_call_operand.vmem [shape: f32[1,128], index: 6, kind: input, shape index: {}]   ;;  %s4121_s7 = inlined_call_operand.vmem [shape: f32[8,128], index: 7, kind: output, shape index: {}]  }
   0x1   :  { %13 = vsyncpa [#allocation5], 0  ;;  %s3954_s24 = smov [#allocation4]   ;;  %s3955_s26 = smov [#allocation2]  }
   0x2   :  { %s35_s25 = sshll.u32 %s3954_s24, 4  ;;  %s21_s27 = sshll.u32 %s3955_s26, 4  ;;  %s36_s25 = int_to_ptr.vmem [resolvable:$true] %s35_s25  ;;  %s22_s27 = int_to_ptr.vmem [resolvable:$true] %s21_s27 }
   0x3   :  { %s3898_s28 = scalar_lea.vmem %s36_s25, 16384  ;;  %p3903_p1 = scmp.lt.s32.totalorder %s36_s25, %s36_s25 }
   0x4   :  { %p3899_p0 = scmp.ne.s32.totalorder %s36_s25, %s3898_s28  ;;  %p3904_p2 = scmp.lt.s32.totalorder %s3898_s28, %s3898_s28 }
   0x6   :  { %p3905_p3 = por %p3904_p2, %p3903_p1 }
   0x8   :  { %p3906_p4 = pnand %p3905_p3, %p3899_p0 }
   0xa   :  { %3909 = shalt.err (!%p3906_p4)
}
   0xb   :  { %s3956_s29 = smov 256   ;;  %s3957_s30 = smov 16  }
   0xc   :  { %41 = dma.hbm_to_vmem [thread:$0]  %s4117_s3, 16384, %s36_s25, [#allocation5], %s3956_s29, %s3956_s29, %s3957_s30  }
   0xd   :  { %s3918_s10 = scalar_lea.vmem %s22_s27, 25088  ;;  %p3923_p6 = scmp.lt.s32.totalorder %s22_s27, %s22_s27 }
   0xe   :  { %p3919_p5 = scmp.ne.s32.totalorder %s22_s27, %s3918_s10  ;;  %p3924_p7 = scmp.lt.s32.totalorder %s3918_s10, %s3918_s10 }
  0x10   :  { %p3925_p8 = por %p3924_p7, %p3923_p6 }
  0x12   :  { %p3926_p9 = pnand %p3925_p8, %p3919_p5 }
  0x14   :  { %3929 = shalt.err (!%p3926_p9)
}
  0x15   :  { %27 = dma.hbm_to_vmem [thread:$0]  %s4115_s1, 25088, %s22_s27, [#allocation3], %s3956_s29, %s3956_s29, %s3957_s30  }
  0x16   :  { %s3958_s13 = smov [#allocation6]  }
  0x17   :  { %s49_s14 = sshll.u32 %s3958_s13, 4  ;;  %s50_s14 = int_to_ptr.vmem [resolvable:$true] %s49_s14 }
  0x18   :  { %s3938_s15 = scalar_lea.vmem %s50_s14, 4096  ;;  %p3943_p11 = scmp.lt.s32.totalorder %s50_s14, %s50_s14 }
  0x19   :  { %p3939_p10 = scmp.ne.s32.totalorder %s50_s14, %s3938_s15  ;;  %p3944_p12 = scmp.lt.s32.totalorder %s3938_s15, %s3938_s15 }
  0x1b   :  { %p3945_p13 = por %p3944_p12, %p3943_p11 }
  0x1d   :  { %p3946_p0 = pnand %p3945_p13, %p3939_p10 }
  0x1f   :  { %3949 = shalt.err (!%p3946_p0)
}
  0x20   :  { %s3959_s3 = smov 64   ;;  %s3960_s16 = smov 4  }
  0x21   :  { %55 = dma.hbm_to_vmem [thread:$0]  %s4119_s5, 4096, %s50_s14, [#allocation5], %s3959_s3, %s3959_s3, %s3960_s16  }
  0x22   :  { %3950 = dma.done.wait [#allocation3], 25088  }
  0x23   :  { %3951 = vsyncadd [#allocation3], 4294942208 }
  0x24   :  { %3952 = dma.done.wait [#allocation5], 20480  }
  0x25   :  { %3953 = vsyncadd [#allocation5], 4294946816  ;;  %v3364_v0 = vld [vmem:[#allocation2 + $0xe4] ss:$16 sps:$4 sm:$0xff]   ;;  %v3368_v2 = vld [vmem:[#allocation2 + $0xe0] ss:$16 sps:$4 sm:$0xff]  }
  0x26   :  { %v3366_v1 = vld [vmem:[#allocation2 + $0x2e4] ss:$16 sps:$4 sm:$0xff]   ;;  %1298 = vmatprep.subr.bf16.mxu0 %v3364_v0  ;;  %v3369_v3 = vld [vmem:[#allocation2 + $0x2e0] ss:$16 sps:$4 sm:$0xff]   ;;  %v69_v48 = vld [vmem:[%s4114_s0 + $0x8] sm:$0xff]  ;;  %vm1294_vm0 = vcmask 130048  }
  0x27   :  { %1339 = vmatprep.subr.bf16.mxu1 %v3366_v1  ;;  %v3370_v4 = vld [vmem:[#allocation2 + $0xc4] ss:$16 sps:$4 sm:$0xff]   ;;  %1299 = vmatpush1.bf16.msra.mxu0 %v3368_v2  ;;  %v3374_v6 = vld [vmem:[#allocation2 + $0xc0] ss:$16 sps:$4 sm:$0xff]   ;;  %v4019_v51 = vcombine.high %v69_v48, %v69_v48 }
  0x28   :  { %1340 = vmatpush1.bf16.msra.mxu1 %v3369_v3  ;;  %v3372_v5 = vld [vmem:[#allocation2 + $0x2c4] ss:$16 sps:$4 sm:$0xff]   ;;  %1300 = vmatprep.subr.bf16.mxu0 %v3370_v4  ;;  %v3375_v7 = vld [vmem:[#allocation2 + $0x2c0] ss:$16 sps:$4 sm:$0xff]  }
  0x29   :  { %1341 = vmatprep.subr.bf16.mxu1 %v3372_v5  ;;  %v3376_v8 = vld [vmem:[#allocation2 + $0xa4] ss:$16 sps:$4 sm:$0xff]   ;;  %v3380_v10 = vld [vmem:[#allocation2 + $0xa0] ss:$16 sps:$4 sm:$0xff]   ;;  %1371 = vmatprep.mubr.bf16.mxu1 %v4019_v51 }
  0x2a   :  { %v3378_v9 = vld [vmem:[#allocation2 + $0x2a4] ss:$16 sps:$4 sm:$0xff]   ;;  %v3381_v11 = vld [vmem:[#allocation2 + $0x2a0] ss:$16 sps:$4 sm:$0xff]  }
  0x2b   :  { %1301 = vmatpush1.bf16.msra.mxu0 %v3374_v6  ;;  %v3382_v12 = vld [vmem:[#allocation2 + $0x84] ss:$16 sps:$4 sm:$0xff]   ;;  %v3386_v14 = vld [vmem:[#allocation2 + $0x80] ss:$16 sps:$4 sm:$0xff]  }
  0x2c   :  { %1342 = vmatpush1.bf16.msra.mxu1 %v3375_v7  ;;  %1302 = vmatprep.subr.bf16.mxu0 %v3376_v8  ;;  %v3384_v13 = vld [vmem:[#allocation2 + $0x284] ss:$16 sps:$4 sm:$0xff]   ;;  %v3387_v15 = vld [vmem:[#allocation2 + $0x280] ss:$16 sps:$4 sm:$0xff]   ;;  %v4025_v7 = vcombine.low %v69_v48, %v69_v48  ;;  %v3524_v48 = vld [vmem:[#allocation2 + $0x1ec] ss:$16 sps:$4 sm:$0xff]  }
  0x2d   :  { %1343 = vmatprep.subr.bf16.mxu1 %v3378_v9  ;;  %v3388_v16 = vld [vmem:[#allocation2 + $0x64] ss:$16 sps:$4 sm:$0xff]   ;;  %v3392_v18 = vld [vmem:[#allocation2 + $0x60] ss:$16 sps:$4 sm:$0xff]  }
  0x2e   :  { %v3390_v17 = vld [vmem:[#allocation2 + $0x264] ss:$16 sps:$4 sm:$0xff]   ;;  %v3393_v19 = vld [vmem:[#allocation2 + $0x260] ss:$16 sps:$4 sm:$0xff]  }
  0x2f   :  { %1303 = vmatpush1.bf16.msra.mxu0 %v3380_v10  ;;  %v3394_v20 = vld [vmem:[#allocation2 + $0x44] ss:$16 sps:$4 sm:$0xff]   ;;  %v3398_v22 = vld [vmem:[#allocation2 + $0x40] ss:$16 sps:$4 sm:$0xff]  }
  0x30   :  { %1344 = vmatpush1.bf16.msra.mxu1 %v3381_v11  ;;  %1304 = vmatprep.subr.bf16.mxu0 %v3382_v12  ;;  %v3396_v21 = vld [vmem:[#allocation2 + $0x244] ss:$16 sps:$4 sm:$0xff]   ;;  %v3399_v23 = vld [vmem:[#allocation2 + $0x240] ss:$16 sps:$4 sm:$0xff]   ;;  %v3475_v11 = vld [vmem:[#allocation2 + $0xec] ss:$16 sps:$4 sm:$0xff]  }
  0x31   :  { %1345 = vmatprep.subr.bf16.mxu1 %v3384_v13  ;;  %v3400_v24 = vld [vmem:[#allocation2 + $0x24] ss:$16 sps:$4 sm:$0xff]   ;;  %v3404_v26 = vld [vmem:[#allocation2 + $0x20] ss:$16 sps:$4 sm:$0xff]   ;;  %v3961_v13 = vmov 0  }
  0x32   :  { %v3402_v25 = vld [vmem:[#allocation2 + $0x224] ss:$16 sps:$4 sm:$0xff]   ;;  %v3405_v27 = vld [vmem:[#allocation2 + $0x220] ss:$16 sps:$4 sm:$0xff]  }
  0x33   :  { %1305 = vmatpush1.bf16.msra.mxu0 %v3386_v14  ;;  %v3406_v28 = vld [vmem:[#allocation2 + $0x4] ss:$16 sps:$4 sm:$0xff]   ;;  %v3410_v30 = vld [vmem:[#allocation2] ss:$16 sps:$4 sm:$0xff]  }
  0x34   :  { %1346 = vmatpush1.bf16.msra.mxu1 %v3387_v15  ;;  %1306 = vmatprep.subr.bf16.mxu0 %v3388_v16  ;;  %v3408_v29 = vld [vmem:[#allocation2 + $0x204] ss:$16 sps:$4 sm:$0xff]   ;;  %v3411_v31 = vld [vmem:[#allocation2 + $0x200] ss:$16 sps:$4 sm:$0xff]   ;;  %v3473_v15 = vld [vmem:[#allocation2 + $0xe8] ss:$16 sps:$4 sm:$0xff]  }
  0x35   :  { %1347 = vmatprep.subr.bf16.mxu1 %v3390_v17  ;;  %v3412_v32 = vld [vmem:[#allocation2 + $0x1e4] ss:$16 sps:$4 sm:$0xff]   ;;  %v3416_v34 = vld [vmem:[#allocation2 + $0x1e0] ss:$16 sps:$4 sm:$0xff]   ;;  %v3479_v17 = vld [vmem:[%s4114_s0 + $0x18] ss:$0 sps:$4 sm:$0xff]  }
  0x36   :  { %v3414_v33 = vld [vmem:[#allocation2 + $0x3e4] ss:$16 sps:$4 sm:$0xff]   ;;  %v3417_v35 = vld [vmem:[#allocation2 + $0x3e0] ss:$16 sps:$4 sm:$0xff]  }
  0x37   :  { %1307 = vmatpush1.bf16.msra.mxu0 %v3392_v18  ;;  %v3418_v36 = vld [vmem:[#allocation2 + $0x1c4] ss:$16 sps:$4 sm:$0xff]   ;;  %v3422_v38 = vld [vmem:[#allocation2 + $0x1c0] ss:$16 sps:$4 sm:$0xff]   ;;  %v3482_v18 = vld [vmem:[#allocation2 + $0xcc] ss:$16 sps:$4 sm:$0xff]  }
  0x38   :  { %1348 = vmatpush1.bf16.msra.mxu1 %v3393_v19  ;;  %1308 = vmatprep.subr.bf16.mxu0 %v3394_v20  ;;  %v3420_v37 = vld [vmem:[#allocation2 + $0x3c4] ss:$16 sps:$4 sm:$0xff]   ;;  %v3423_v39 = vld [vmem:[#allocation2 + $0x3c0] ss:$16 sps:$4 sm:$0xff]   ;;  %v3480_v20 = vld [vmem:[#allocation2 + $0xc8] ss:$16 sps:$4 sm:$0xff]  }
  0x39   :  { %1349 = vmatprep.subr.bf16.mxu1 %v3396_v21  ;;  %v3424_v40 = vld [vmem:[#allocation2 + $0x1a4] ss:$16 sps:$4 sm:$0xff]   ;;  %v3428_v42 = vld [vmem:[#allocation2 + $0x1a0] ss:$16 sps:$4 sm:$0xff]  }
  0x3a   :  { %v3426_v41 = vld [vmem:[#allocation2 + $0x3a4] ss:$16 sps:$4 sm:$0xff]   ;;  %v3429_v43 = vld [vmem:[#allocation2 + $0x3a0] ss:$16 sps:$4 sm:$0xff]  }
  0x3b   :  { %1309 = vmatpush1.bf16.msra.mxu0 %v3398_v22  ;;  %v3430_v44 = vld [vmem:[#allocation2 + $0x184] ss:$16 sps:$4 sm:$0xff]   ;;  %v3434_v49 = vld [vmem:[#allocation2 + $0x180] ss:$16 sps:$4 sm:$0xff]   ;;  %v3488_v22 = vld [vmem:[#allocation2 + $0xac] ss:$16 sps:$4 sm:$0xff]  }
  0x3c   :  { %1350 = vmatpush1.bf16.msra.mxu1 %v3399_v23  ;;  %1310 = vmatprep.subr.bf16.mxu0 %v3400_v24  ;;  %v3432_v45 = vld [vmem:[#allocation2 + $0x384] ss:$16 sps:$4 sm:$0xff]   ;;  %v3435_v50 = vld [vmem:[#allocation2 + $0x380] ss:$16 sps:$4 sm:$0xff]   ;;  %v3486_v24 = vld [vmem:[#allocation2 + $0xa8] ss:$16 sps:$4 sm:$0xff]  }
  0x3d   :  { %1351 = vmatprep.subr.bf16.mxu1 %v3402_v25  ;;  %v68_v46 = vld [vmem:[%s4114_s0] sm:$0xff] }
  0x3e   :  { %v4014_v47 = vcombine.high %v68_v46, %v68_v46  ;;  %v3436_v52 = vld [vmem:[#allocation2 + $0x164] ss:$16 sps:$4 sm:$0xff]   ;;  %v3440_v54 = vld [vmem:[#allocation2 + $0x160] ss:$16 sps:$4 sm:$0xff]   ;;  %v4023_v6 = vcombine.low %v68_v46, %v68_v46  ;;  %v3516_v46 = vld [vmem:[#allocation2 + $0x8] ss:$16 sps:$4 sm:$0xff]  }
  0x3f   :  { %1311 = vmatpush1.bf16.msra.mxu0 %v3404_v26  ;;  %v3438_v53 = vld [vmem:[#allocation2 + $0x364] ss:$16 sps:$4 sm:$0xff]   ;;  %v3441_v55 = vld [vmem:[#allocation2 + $0x360] ss:$16 sps:$4 sm:$0xff]   ;;  %v3494_v26 = vld [vmem:[#allocation2 + $0x8c] ss:$16 sps:$4 sm:$0xff]  }
  0x40   :  { %1352 = vmatpush1.bf16.msra.mxu1 %v3405_v27  ;;  %1312 = vmatprep.subr.bf16.mxu0 %v3406_v28  ;;  %v3442_v56 = vld [vmem:[#allocation2 + $0x144] ss:$16 sps:$4 sm:$0xff]   ;;  %v3446_v58 = vld [vmem:[#allocation2 + $0x140] ss:$16 sps:$4 sm:$0xff]   ;;  %v3492_v28 = vld [vmem:[#allocation2 + $0x88] ss:$16 sps:$4 sm:$0xff]  }
  0x41   :  { %1353 = vmatprep.subr.bf16.mxu1 %v3408_v29  ;;  %1330 = vmatprep.mubr.bf16.mxu0 %v4014_v47  ;;  %v3444_v57 = vld [vmem:[#allocation2 + $0x344] ss:$16 sps:$4 sm:$0xff]   ;;  %v3447_v59 = vld [vmem:[#allocation2 + $0x340] ss:$16 sps:$4 sm:$0xff]  }
  0x42   :  { %v3448_v60 = vld [vmem:[#allocation2 + $0x124] ss:$16 sps:$4 sm:$0xff]   ;;  %v3452_v62 = vld [vmem:[#allocation2 + $0x120] ss:$16 sps:$4 sm:$0xff]  }
  0x43   :  { %1313 = vmatpush1.bf16.msra.mxu0 %v3410_v30  ;;  %v3450_v61 = vld [vmem:[#allocation2 + $0x324] ss:$16 sps:$4 sm:$0xff]   ;;  %v3453_v63 = vld [vmem:[#allocation2 + $0x320] ss:$16 sps:$4 sm:$0xff]   ;;  %v3500_v30 = vld [vmem:[#allocation2 + $0x6c] ss:$16 sps:$4 sm:$0xff]  }
  0x44   :  { %1354 = vmatpush1.bf16.msra.mxu1 %v3411_v31  ;;  %1314 = vmatprep.subr.bf16.mxu0 %v3412_v32  ;;  %v3454_v0 = vld [vmem:[#allocation2 + $0x104] ss:$16 sps:$4 sm:$0xff]   ;;  %v3458_v2 = vld [vmem:[#allocation2 + $0x100] ss:$16 sps:$4 sm:$0xff]  }
  0x45   :  { %1355 = vmatprep.subr.bf16.mxu1 %v3414_v33  ;;  %v3456_v1 = vld [vmem:[#allocation2 + $0x304] ss:$16 sps:$4 sm:$0xff]   ;;  %v3459_v3 = vld [vmem:[#allocation2 + $0x300] ss:$16 sps:$4 sm:$0xff]  }
  0x46   :  { %v3466_v4 = vld [vmem:[#allocation2 + $0x4e4] ss:$16 sps:$4 sm:$0xff]   ;;  %v3464_v8 = vld [vmem:[#allocation2 + $0x4e0] ss:$16 sps:$4 sm:$0xff]  }
  0x47   :  { %1315 = vmatpush2.bf16.msra.mxu0 %v3416_v34  ;;  %v3469_v5 = vld [vmem:[#allocation2 + $0x604] ss:$16 sps:$4 sm:$0xff]   ;;  %v3467_v9 = vld [vmem:[#allocation2 + $0x600] ss:$16 sps:$4 sm:$0xff]   ;;  %v3498_v34 = vld [vmem:[#allocation2 + $0x68] ss:$16 sps:$4 sm:$0xff]  }
  0x48   :  { %1356 = vmatpush2.bf16.msra.mxu1 %v3417_v35  ;;  %1316 = vmatprep.subr.bf16.mxu0 %v3418_v36  ;;  %v3472_v10 = vld [vmem:[#allocation2 + $0x4c4] ss:$16 sps:$4 sm:$0xff]   ;;  %v3470_v12 = vld [vmem:[#allocation2 + $0x4c0] ss:$16 sps:$4 sm:$0xff]   ;;  %v3506_v36 = vld [vmem:[#allocation2 + $0x4c] ss:$16 sps:$4 sm:$0xff]  }
  0x49   :  { %1357 = vmatprep.subr.bf16.mxu1 %v3420_v37  ;;  %v3478_v14 = vld [vmem:[#allocation2 + $0x4a4] ss:$16 sps:$4 sm:$0xff]   ;;  %v3476_v16 = vld [vmem:[#allocation2 + $0x4a0] ss:$16 sps:$4 sm:$0xff]  }
  0x4a   :  { %v3485_v19 = vld [vmem:[#allocation2 + $0x484] ss:$16 sps:$4 sm:$0xff]   ;;  %v3483_v21 = vld [vmem:[#allocation2 + $0x480] ss:$16 sps:$4 sm:$0xff]  }
  0x4b   :  { %1317 = vmatpush2.bf16.msra.mxu0 %v3422_v38  ;;  %v3491_v23 = vld [vmem:[#allocation2 + $0x464] ss:$16 sps:$4 sm:$0xff]   ;;  %v3489_v25 = vld [vmem:[#allocation2 + $0x460] ss:$16 sps:$4 sm:$0xff]   ;;  %v3504_v38 = vld [vmem:[#allocation2 + $0x48] ss:$16 sps:$4 sm:$0xff]  }
  0x4c   :  { %1358 = vmatpush2.bf16.msra.mxu1 %v3423_v39  ;;  %1318 = vmatprep.subr.bf16.mxu0 %v3424_v40  ;;  %v3497_v27 = vld [vmem:[#allocation2 + $0x444] ss:$16 sps:$4 sm:$0xff]   ;;  %v3495_v29 = vld [vmem:[#allocation2 + $0x440] ss:$16 sps:$4 sm:$0xff]   ;;  %v3512_v40 = vld [vmem:[#allocation2 + $0x2c] ss:$16 sps:$4 sm:$0xff]  }
  0x4d   :  { %1359 = vmatprep.subr.bf16.mxu1 %v3426_v41  ;;  %v3503_v31 = vld [vmem:[#allocation2 + $0x424] ss:$16 sps:$4 sm:$0xff]   ;;  %v3501_v35 = vld [vmem:[#allocation2 + $0x420] ss:$16 sps:$4 sm:$0xff]  }
  0x4e   :  { %v4038_v32 = vld [vmem:[%s4114_s0 + $0x10] sm:$0xff] }
  0x4f   :  { %1319 = vmatpush2.bf16.msra.mxu0 %v3428_v42  ;;  %v4042_v33 = vcombine.high %v4038_v32, %v4038_v32  ;;  %v3509_v37 = vld [vmem:[#allocation2 + $0x404] ss:$16 sps:$4 sm:$0xff]   ;;  %v3507_v39 = vld [vmem:[#allocation2 + $0x400] ss:$16 sps:$4 sm:$0xff]   ;;  %v3510_v42 = vld [vmem:[#allocation2 + $0x28] ss:$16 sps:$4 sm:$0xff]  }
  0x50   :  { %1360 = vmatpush2.bf16.msra.mxu1 %v3429_v43  ;;  %1320 = vmatprep.subr.bf16.mxu0 %v3430_v44  ;;  %v3515_v41 = vld [vmem:[#allocation2 + $0x5e4] ss:$16 sps:$4 sm:$0xff]   ;;  %v3513_v43 = vld [vmem:[#allocation2 + $0x5e0] ss:$16 sps:$4 sm:$0xff]   ;;  %v3518_v44 = vld [vmem:[#allocation2 + $0xc] ss:$16 sps:$4 sm:$0xff]  }
  0x51   :  { %1361 = vmatprep.subr.bf16.mxu1 %v3432_v45  ;;  %v3521_v45 = vld [vmem:[#allocation2 + $0x5c4] ss:$16 sps:$4 sm:$0xff]  }
  0x53   :  { %1321 = vmatpush2.bf16.msra.mxu0 %v3434_v49  ;;  %v3527_v49 = vld [vmem:[#allocation2 + $0x5a4] ss:$16 sps:$4 sm:$0xff]  }
  0x54   :  { %1362 = vmatpush2.bf16.msra.mxu1 %v3435_v50  ;;  %1322 = vmatprep.subr.bf16.mxu0 %v3436_v52  ;;  %v3522_v50 = vld [vmem:[#allocation2 + $0x1e8] ss:$16 sps:$4 sm:$0xff]   ;;  %v3525_v52 = vld [vmem:[#allocation2 + $0x5a0] ss:$16 sps:$4 sm:$0xff]  }
  0x55   :  { %1363 = vmatprep.subr.bf16.mxu1 %v3438_v53  ;;  %v3530_v53 = vld [vmem:[#allocation2 + $0x1cc] ss:$16 sps:$4 sm:$0xff]  }
  0x57   :  { %1323 = vmatpush2.bf16.msra.mxu0 %v3440_v54  ;;  %v3533_v54 = vld [vmem:[#allocation2 + $0x584] ss:$16 sps:$4 sm:$0xff]  }
  0x58   :  { %1364 = vmatpush2.bf16.msra.mxu1 %v3441_v55  ;;  %1324 = vmatprep.subr.bf16.mxu0 %v3442_v56  ;;  %v3528_v55 = vld [vmem:[#allocation2 + $0x1c8] ss:$16 sps:$4 sm:$0xff]   ;;  %v3531_v56 = vld [vmem:[#allocation2 + $0x580] ss:$16 sps:$4 sm:$0xff]  }
  0x59   :  { %1365 = vmatprep.subr.bf16.mxu1 %v3444_v57  ;;  %v3536_v57 = vld [vmem:[#allocation2 + $0x1ac] ss:$16 sps:$4 sm:$0xff]  }
  0x5b   :  { %1325 = vmatpush2.bf16.msra.mxu0 %v3446_v58  ;;  %v3539_v58 = vld [vmem:[#allocation2 + $0x564] ss:$16 sps:$4 sm:$0xff]  }
  0x5c   :  { %1366 = vmatpush2.bf16.msra.mxu1 %v3447_v59  ;;  %1326 = vmatprep.subr.bf16.mxu0 %v3448_v60  ;;  %v3534_v59 = vld [vmem:[#allocation2 + $0x1a8] ss:$16 sps:$4 sm:$0xff]   ;;  %v3537_v60 = vld [vmem:[#allocation2 + $0x560] ss:$16 sps:$4 sm:$0xff]  }
  0x5d   :  { %1367 = vmatprep.subr.bf16.mxu1 %v3450_v61  ;;  %v3542_v61 = vld [vmem:[#allocation2 + $0x18c] ss:$16 sps:$4 sm:$0xff]  }
  0x5f   :  { %1327 = vmatpush2.bf16.msra.mxu0 %v3452_v62  ;;  %v3545_v62 = vld [vmem:[#allocation2 + $0x544] ss:$16 sps:$4 sm:$0xff]  }
  0x60   :  { %1368 = vmatpush2.bf16.msra.mxu1 %v3453_v63  ;;  %1328 = vmatprep.subr.bf16.mxu0 %v3454_v0  ;;  %v3540_v63 = vld [vmem:[#allocation2 + $0x188] ss:$16 sps:$4 sm:$0xff]   ;;  %v3543_v0 = vld [vmem:[#allocation2 + $0x540] ss:$16 sps:$4 sm:$0xff]  }
  0x61   :  { %1369 = vmatprep.subr.bf16.mxu1 %v3456_v1  ;;  %v3548_v1 = vld [vmem:[#allocation2 + $0x16c] ss:$16 sps:$4 sm:$0xff]  }
  0x63   :  { %1329 = vmatpush2.bf16.msra.mxu0 %v3458_v2  ;;  %v3551_v2 = vld [vmem:[#allocation2 + $0x524] ss:$16 sps:$4 sm:$0xff]  }
  0x64   :  { %1370 = vmatpush2.bf16.msra.mxu1 %v3459_v3  ;;  %1380 = vmatprep.subr.bf16.mxu0 %v3466_v4  ;;  %v3546_v3 = vld [vmem:[#allocation2 + $0x168] ss:$16 sps:$4 sm:$0xff]   ;;  %v3549_v4 = vld [vmem:[#allocation2 + $0x520] ss:$16 sps:$4 sm:$0xff]  }
  0x65   :  { %1435 = vmatprep.subr.bf16.mxu1 %v3469_v5  ;;  %v3554_v5 = vld [vmem:[#allocation2 + $0x14c] ss:$16 sps:$4 sm:$0xff]  }
  0x66   :  { %1331 = vmatmul.mubr.bf16.vlgmr.msra.gmra.mxu0 %v4023_v6 }
  0x67   :  { %1372 = vmatmul.mubr.bf16.vlgmr.msra.gmra.mxu1 %v4025_v7  ;;  %1381 = vmatpush1.bf16.msra.mxu0 %v3464_v8  ;;  %v3557_v8 = vld [vmem:[#allocation2 + $0x504] ss:$16 sps:$4 sm:$0xff]  }
  0x68   :  { %1436 = vmatpush1.bf16.msra.mxu1 %v3467_v9  ;;  %1382 = vmatprep.subr.bf16.mxu0 %v3472_v10  ;;  %v3552_v9 = vld [vmem:[#allocation2 + $0x148] ss:$16 sps:$4 sm:$0xff]   ;;  %v3555_v10 = vld [vmem:[#allocation2 + $0x500] ss:$16 sps:$4 sm:$0xff]  }
  0x69   :  { %1453 = vmatprep.mubr.bf16.mxu1 %v3961_v13  ;;  %1462 = vmatprep.subr.bf16.mxu1 %v3475_v11  ;;  %v3562_v11 = vld [vmem:[#allocation2 + $0x12c] ss:$16 sps:$4 sm:$0xff]  }
  0x6a   :  { %1412 = vmatprep.mubr.bf16.mxu0 %v4042_v33 }
  0x6b   :  { %1383 = vmatpush1.bf16.msra.mxu0 %v3470_v12  ;;  %v3565_v12 = vld [vmem:[#allocation2 + $0x2ec] ss:$16 sps:$4 sm:$0xff]  }
  0x6c   :  { %1384 = vmatprep.subr.bf16.mxu0 %v3478_v14  ;;  %v4047_v14 = vcombine.low %v4038_v32, %v4038_v32  ;;  %v3587_v32 = vld [vmem:[#allocation2 + $0x268] ss:$16 sps:$4 sm:$0xff]  }
  0x6f   :  { %3149 = vmatmul.mubr.msk.bf16.vlgmr.msra.gmra.mxu1 %vm1294_vm0, %v3479_v17  ;;  %1385 = vmatpush1.bf16.msra.mxu0 %v3476_v16  ;;  %v3563_v16 = vld [vmem:[#allocation2 + $0x2e8] ss:$16 sps:$4 sm:$0xff]   ;;  %v3568_v17 = vld [vmem:[#allocation2 + $0x10c] ss:$16 sps:$4 sm:$0xff]  }
  0x70   :  { %1463 = vmatpush1.bf16.msra.mxu1 %v3473_v15  ;;  %1386 = vmatprep.subr.bf16.mxu0 %v3485_v19  ;;  %v3560_v15 = vld [vmem:[#allocation2 + $0x128] ss:$16 sps:$4 sm:$0xff]  }
  0x71   :  { %1464 = vmatprep.subr.bf16.mxu1 %v3482_v18  ;;  %1494 = vmatprep.mubr.bf16.mxu1 %v4014_v47  ;;  %v3519_v47 = vld [vmem:[#allocation2 + $0x5c0] ss:$16 sps:$4 sm:$0xff]   ;;  %v3571_v18 = vld [vmem:[#allocation2 + $0x2cc] ss:$16 sps:$4 sm:$0xff]   ;;  %v3566_v19 = vld [vmem:[#allocation2 + $0x108] ss:$16 sps:$4 sm:$0xff]  }
  0x73   :  { %1387 = vmatpush1.bf16.msra.mxu0 %v3483_v21  ;;  %v3574_v21 = vld [vmem:[#allocation2 + $0x4ec] ss:$16 sps:$4 sm:$0xff]  }
  0x74   :  { %1465 = vmatpush1.bf16.msra.mxu1 %v3480_v20  ;;  %1388 = vmatprep.subr.bf16.mxu0 %v3491_v23  ;;  %v3569_v20 = vld [vmem:[#allocation2 + $0x2c8] ss:$16 sps:$4 sm:$0xff]  }
  0x75   :  { %1466 = vmatprep.subr.bf16.mxu1 %v3488_v22  ;;  %v3577_v22 = vld [vmem:[#allocation2 + $0x2ac] ss:$16 sps:$4 sm:$0xff]   ;;  %v3572_v23 = vld [vmem:[#allocation2 + $0x4e8] ss:$16 sps:$4 sm:$0xff]  }
  0x77   :  { %1389 = vmatpush1.bf16.msra.mxu0 %v3489_v25  ;;  %v3580_v25 = vld [vmem:[#allocation2 + $0x4cc] ss:$16 sps:$4 sm:$0xff]  }
  0x78   :  { %1467 = vmatpush1.bf16.msra.mxu1 %v3486_v24  ;;  %1390 = vmatprep.subr.bf16.mxu0 %v3497_v27  ;;  %v3575_v24 = vld [vmem:[#allocation2 + $0x2a8] ss:$16 sps:$4 sm:$0xff]  }
  0x79   :  { %1468 = vmatprep.subr.bf16.mxu1 %v3494_v26  ;;  %v3583_v26 = vld [vmem:[#allocation2 + $0x28c] ss:$16 sps:$4 sm:$0xff]   ;;  %v3578_v27 = vld [vmem:[#allocation2 + $0x4c8] ss:$16 sps:$4 sm:$0xff]  }
  0x7b   :  { %1391 = vmatpush1.bf16.msra.mxu0 %v3495_v29  ;;  %v3586_v29 = vld [vmem:[#allocation2 + $0x4ac] ss:$16 sps:$4 sm:$0xff]  }
  0x7c   :  { %1469 = vmatpush1.bf16.msra.mxu1 %v3492_v28  ;;  %1392 = vmatprep.subr.bf16.mxu0 %v3503_v31  ;;  %v3581_v28 = vld [vmem:[#allocation2 + $0x288] ss:$16 sps:$4 sm:$0xff]  }
  0x7d   :  { %1470 = vmatprep.subr.bf16.mxu1 %v3500_v30  ;;  %v3589_v30 = vld [vmem:[#allocation2 + $0x26c] ss:$16 sps:$4 sm:$0xff]   ;;  %v3584_v31 = vld [vmem:[#allocation2 + $0x4a8] ss:$16 sps:$4 sm:$0xff]  }
  0x7f   :  { %1393 = vmatpush1.bf16.msra.mxu0 %v3501_v35  ;;  %v3590_v35 = vld [vmem:[#allocation2 + $0x488] ss:$16 sps:$4 sm:$0xff]  }
  0x80   :  { %1471 = vmatpush1.bf16.msra.mxu1 %v3498_v34  ;;  %1394 = vmatprep.subr.bf16.mxu0 %v3509_v37  ;;  %v3595_v34 = vld [vmem:[#allocation2 + $0x24c] ss:$16 sps:$4 sm:$0xff]  }
  0x81   :  { %1472 = vmatprep.subr.bf16.mxu1 %v3506_v36  ;;  %v3598_v36 = vld [vmem:[#allocation2 + $0x46c] ss:$16 sps:$4 sm:$0xff]  }
  0x82   :  { %v3601_v37 = vld [vmem:[#allocation2 + $0x22c] ss:$16 sps:$4 sm:$0xff]  }
  0x83   :  { %1395 = vmatpush1.bf16.msra.mxu0 %v3507_v39  ;;  %v3599_v39 = vld [vmem:[#allocation2 + $0x228] ss:$16 sps:$4 sm:$0xff]  }
  0x84   :  { %1473 = vmatpush1.bf16.msra.mxu1 %v3504_v38  ;;  %1396 = vmatprep.subr.bf16.mxu0 %v3515_v41  ;;  %v3596_v38 = vld [vmem:[#allocation2 + $0x468] ss:$16 sps:$4 sm:$0xff]  }
  0x85   :  { %1474 = vmatprep.subr.bf16.mxu1 %v3512_v40  ;;  %v3607_v40 = vld [vmem:[#allocation2 + $0x20c] ss:$16 sps:$4 sm:$0xff]   ;;  %v3602_v41 = vld [vmem:[#allocation2 + $0x448] ss:$16 sps:$4 sm:$0xff]  }
  0x87   :  { %1397 = vmatpush2.bf16.msra.mxu0 %v3513_v43  ;;  %v3610_v43 = vld [vmem:[#allocation2 + $0x42c] ss:$16 sps:$4 sm:$0xff]  }
  0x88   :  { %1475 = vmatpush1.bf16.msra.mxu1 %v3510_v42  ;;  %1398 = vmatprep.subr.bf16.mxu0 %v3521_v45  ;;  %v3605_v42 = vld [vmem:[#allocation2 + $0x208] ss:$16 sps:$4 sm:$0xff]  }
  0x89   :  { %1476 = vmatprep.subr.bf16.mxu1 %v3518_v44  ;;  %v3613_v44 = vld [vmem:[#allocation2 + $0x3ec] ss:$16 sps:$4 sm:$0xff]   ;;  %v3608_v45 = vld [vmem:[#allocation2 + $0x428] ss:$16 sps:$4 sm:$0xff]  }
  0x8b   :  { %1399 = vmatpush2.bf16.msra.mxu0 %v3519_v47  ;;  %v3616_v47 = vld [vmem:[#allocation2 + $0x40c] ss:$16 sps:$4 sm:$0xff]  }
  0x8c   :  { %1477 = vmatpush1.bf16.msra.mxu1 %v3516_v46  ;;  %1400 = vmatprep.subr.bf16.mxu0 %v3527_v49  ;;  %v3611_v46 = vld [vmem:[#allocation2 + $0x3e8] ss:$16 sps:$4 sm:$0xff]  }
  0x8d   :  { %1478 = vmatprep.subr.bf16.mxu1 %v3524_v48  ;;  %v3619_v48 = vld [vmem:[#allocation2 + $0x3cc] ss:$16 sps:$4 sm:$0xff]   ;;  %v3614_v49 = vld [vmem:[#allocation2 + $0x408] ss:$16 sps:$4 sm:$0xff]  }
  0x8f   :  { %1401 = vmatpush2.bf16.msra.mxu0 %v3525_v52  ;;  %v3622_v52 = vld [vmem:[#allocation2 + $0x5ec] ss:$16 sps:$4 sm:$0xff]  }
  0x90   :  { %1479 = vmatpush2.bf16.msra.mxu1 %v3522_v50  ;;  %1402 = vmatprep.subr.bf16.mxu0 %v3533_v54  ;;  %v3617_v50 = vld [vmem:[#allocation2 + $0x3c8] ss:$16 sps:$4 sm:$0xff]  }
  0x91   :  { %1480 = vmatprep.subr.bf16.mxu1 %v3530_v53  ;;  %v3625_v53 = vld [vmem:[#allocation2 + $0x3ac] ss:$16 sps:$4 sm:$0xff]   ;;  %v3620_v54 = vld [vmem:[#allocation2 + $0x5e8] ss:$16 sps:$4 sm:$0xff]  }
  0x93   :  { %1403 = vmatpush2.bf16.msra.mxu0 %v3531_v56  ;;  %v3628_v56 = vld [vmem:[#allocation2 + $0x5cc] ss:$16 sps:$4 sm:$0xff]  }
  0x94   :  { %1481 = vmatpush2.bf16.msra.mxu1 %v3528_v55  ;;  %1404 = vmatprep.subr.bf16.mxu0 %v3539_v58  ;;  %v3623_v55 = vld [vmem:[#allocation2 + $0x3a8] ss:$16 sps:$4 sm:$0xff]  }
  0x95   :  { %1482 = vmatprep.subr.bf16.mxu1 %v3536_v57  ;;  %v3631_v57 = vld [vmem:[#allocation2 + $0x38c] ss:$16 sps:$4 sm:$0xff]   ;;  %v3626_v58 = vld [vmem:[#allocation2 + $0x5c8] ss:$16 sps:$4 sm:$0xff]  }
  0x97   :  { %1405 = vmatpush2.bf16.msra.mxu0 %v3537_v60  ;;  %v3634_v60 = vld [vmem:[#allocation2 + $0x5ac] ss:$16 sps:$4 sm:$0xff]  }
  0x98   :  { %1483 = vmatpush2.bf16.msra.mxu1 %v3534_v59  ;;  %1406 = vmatprep.subr.bf16.mxu0 %v3545_v62  ;;  %v3629_v59 = vld [vmem:[#allocation2 + $0x388] ss:$16 sps:$4 sm:$0xff]  }
  0x99   :  { %1484 = vmatprep.subr.bf16.mxu1 %v3542_v61  ;;  %v3637_v61 = vld [vmem:[#allocation2 + $0x36c] ss:$16 sps:$4 sm:$0xff]   ;;  %v3632_v62 = vld [vmem:[#allocation2 + $0x5a8] ss:$16 sps:$4 sm:$0xff]  }
  0x9b   :  { %1407 = vmatpush2.bf16.msra.mxu0 %v3543_v0  ;;  %v3640_v0 = vld [vmem:[#allocation2 + $0x58c] ss:$16 sps:$4 sm:$0xff]  }
  0x9c   :  { %1485 = vmatpush2.bf16.msra.mxu1 %v3540_v63  ;;  %1408 = vmatprep.subr.bf16.mxu0 %v3551_v2  ;;  %v3635_v63 = vld [vmem:[#allocation2 + $0x368] ss:$16 sps:$4 sm:$0xff]  }
  0x9d   :  { %1486 = vmatprep.subr.bf16.mxu1 %v3548_v1  ;;  %v3643_v1 = vld [vmem:[#allocation2 + $0x34c] ss:$16 sps:$4 sm:$0xff]   ;;  %v3638_v2 = vld [vmem:[#allocation2 + $0x588] ss:$16 sps:$4 sm:$0xff]  }
  0x9f   :  { %1409 = vmatpush2.bf16.msra.mxu0 %v3549_v4  ;;  %v3646_v4 = vld [vmem:[#allocation2 + $0x56c] ss:$16 sps:$4 sm:$0xff]  }
  0xa0   :  { %1487 = vmatpush2.bf16.msra.mxu1 %v3546_v3  ;;  %1410 = vmatprep.subr.bf16.mxu0 %v3557_v8  ;;  %v3641_v3 = vld [vmem:[#allocation2 + $0x348] ss:$16 sps:$4 sm:$0xff]  }
  0xa1   :  { %1488 = vmatprep.subr.bf16.mxu1 %v3554_v5  ;;  %v3649_v5 = vld [vmem:[#allocation2 + $0x32c] ss:$16 sps:$4 sm:$0xff]   ;;  %v3644_v8 = vld [vmem:[#allocation2 + $0x568] ss:$16 sps:$4 sm:$0xff]  }
  0xa3   :  { %1411 = vmatpush2.bf16.msra.mxu0 %v3555_v10  ;;  %v3652_v10 = vld [vmem:[#allocation2 + $0x54c] ss:$16 sps:$4 sm:$0xff]  }
  0xa4   :  { %1489 = vmatpush2.bf16.msra.mxu1 %v3552_v9  ;;  %1503 = vmatprep.subr.bf16.mxu0 %v3565_v12  ;;  %v3647_v9 = vld [vmem:[#allocation2 + $0x328] ss:$16 sps:$4 sm:$0xff]  }
  0xa5   :  { %1490 = vmatprep.subr.bf16.mxu1 %v3562_v11  ;;  %v3655_v11 = vld [vmem:[#allocation2 + $0x30c] ss:$16 sps:$4 sm:$0xff]   ;;  %v3650_v12 = vld [vmem:[#allocation2 + $0x548] ss:$16 sps:$4 sm:$0xff]  }
  0xa6   :  { %1413 = vmatmul.mubr.bf16.vlgmr.msra.gmra.mxu0 %v4047_v14 }
  0xa7   :  { %1504 = vmatpush1.bf16.msra.mxu0 %v3563_v16  ;;  %1535 = vmatprep.mubr.bf16.mxu0 %v4019_v51  ;;  %v3592_v51 = vld [vmem:[#allocation2 + $0x48c] ss:$16 sps:$4 sm:$0xff]  }
  0xa8   :  { %1491 = vmatpush2.bf16.msra.mxu1 %v3560_v15  ;;  %1505 = vmatprep.subr.bf16.mxu0 %v3571_v18  ;;  %v3653_v15 = vld [vmem:[#allocation2 + $0x308] ss:$16 sps:$4 sm:$0xff]   ;;  %v3658_v16 = vld [vmem:[#allocation2 + $0x52c] ss:$16 sps:$4 sm:$0xff]  }
  0xa9   :  { %1492 = vmatprep.subr.bf16.mxu1 %v3568_v17  ;;  %v3661_v17 = vld [vmem:[#allocation2 + $0x60c] ss:$16 sps:$4 sm:$0xff]   ;;  %v3656_v18 = vld [vmem:[#allocation2 + $0x528] ss:$16 sps:$4 sm:$0xff]  }
  0xab   :  { %1506 = vmatpush1.bf16.msra.mxu0 %v3569_v20  ;;  %v3664_v20 = vld [vmem:[#allocation2 + $0x50c] ss:$16 sps:$4 sm:$0xff]  }
  0xac   :  { %1493 = vmatpush2.bf16.msra.mxu1 %v3566_v19  ;;  %1507 = vmatprep.subr.bf16.mxu0 %v3577_v22  ;;  %v3659_v19 = vld [vmem:[#allocation2 + $0x608] ss:$16 sps:$4 sm:$0xff]  }
  0xad   :  { %1544 = vmatprep.subr.bf16.mxu1 %v3574_v21  ;;  %v3667_v21 = vld [vmem:[#allocation4 + $0xe4] ss:$16 sps:$4 sm:$0xff]   ;;  %v3662_v22 = vld [vmem:[#allocation2 + $0x508] ss:$16 sps:$4 sm:$0xff]  }
  0xaf   :  { %1495 = vmatmul.mubr.bf16.vlgmr.msra.gmra.mxu1 %v4023_v6  ;;  %1508 = vmatpush1.bf16.msra.mxu0 %v3575_v24  ;;  %v3593_v6 = vld [vmem:[#allocation2 + $0x248] ss:$16 sps:$4 sm:$0xff]   ;;  %v3670_v24 = vld [vmem:[#allocation4 + $0xc4] ss:$16 sps:$4 sm:$0xff]  }
  0xb0   :  { %1545 = vmatpush1.bf16.msra.mxu1 %v3572_v23  ;;  %1509 = vmatprep.subr.bf16.mxu0 %v3583_v26  ;;  %v3665_v23 = vld [vmem:[#allocation4 + $0xe0] ss:$16 sps:$4 sm:$0xff]   ;;  %v3889_v26 = vld [vmem:[%s4114_s0 + $0x18] ss:$0 sps:$4 sm:$0xff]  }
  0xb1   :  { %1546 = vmatprep.subr.bf16.mxu1 %v3580_v25  ;;  %1576 = vmatprep.mubr.bf16.mxu1 %v4042_v33  ;;  %v3604_v33 = vld [vmem:[#allocation2 + $0x44c] ss:$16 sps:$4 sm:$0xff]   ;;  %v3668_v25 = vld [vmem:[#allocation4 + $0xc0] ss:$16 sps:$4 sm:$0xff]  }
  0xb3   :  { %1510 = vmatpush1.bf16.msra.mxu0 %v3581_v28  ;;  %v3674_v28 = vld [vmem:[#allocation4 + $0x80] ss:$16 sps:$4 sm:$0xff]  }
  0xb4   :  { %1547 = vmatpush1.bf16.msra.mxu1 %v3578_v27  ;;  %1511 = vmatprep.subr.bf16.mxu0 %v3589_v30  ;;  %v3671_v27 = vld [vmem:[#allocation4 + $0xa0] ss:$16 sps:$4 sm:$0xff]   ;;  %v3721_v30 = vld [vmem:[#allocation4 + $0x2e4] ss:$16 sps:$4 sm:$0xff]  }
  0xb5   :  { %1548 = vmatprep.subr.bf16.mxu1 %v3586_v29  ;;  %v3719_v29 = vld [vmem:[#allocation4 + $0x2e0] ss:$16 sps:$4 sm:$0xff]  }
  0xb7   :  { %1512 = vmatpush1.bf16.msra.mxu0 %v3587_v32  ;;  %v3725_v32 = vld [vmem:[#allocation4 + $0x2c0] ss:$16 sps:$4 sm:$0xff]  }
  0xb8   :  { %1549 = vmatpush1.bf16.msra.mxu1 %v3584_v31  ;;  %1513 = vmatprep.subr.bf16.mxu0 %v3595_v34  ;;  %v3679_v31 = vld [vmem:[#allocation4 + $0x64] ss:$16 sps:$4 sm:$0xff]  }
  0xb9   :  { %1550 = vmatprep.subr.bf16.mxu1 %v3592_v51  ;;  %v3727_v51 = vld [vmem:[#allocation4 + $0x2c4] ss:$16 sps:$4 sm:$0xff]  }
  0xba   :  { %v3682_v34 = vld [vmem:[#allocation4 + $0x44] ss:$16 sps:$4 sm:$0xff]  }
  0xbb   :  { %1514 = vmatpush1.bf16.msra.mxu0 %v3593_v6  ;;  %v3731_v6 = vld [vmem:[#allocation4 + $0x2a0] ss:$16 sps:$4 sm:$0xff]  }
  0xbc   :  { %1551 = vmatpush1.bf16.msra.mxu1 %v3590_v35  ;;  %1515 = vmatprep.subr.bf16.mxu0 %v3601_v37  ;;  %v3680_v35 = vld [vmem:[#allocation4 + $0x40] ss:$16 sps:$4 sm:$0xff]   ;;  %v3685_v37 = vld [vmem:[#allocation4 + $0x24] ss:$16 sps:$4 sm:$0xff]  }
  0xbd   :  { %1552 = vmatprep.subr.bf16.mxu1 %v3598_v36  ;;  %v3733_v36 = vld [vmem:[#allocation4 + $0x2a4] ss:$16 sps:$4 sm:$0xff]  }
  0xbf   :  { %1516 = vmatpush1.bf16.msra.mxu0 %v3599_v39  ;;  %v3737_v39 = vld [vmem:[#allocation4 + $0x280] ss:$16 sps:$4 sm:$0xff]  }
  0xc0   :  { %1553 = vmatpush1.bf16.msra.mxu1 %v3596_v38  ;;  %1517 = vmatprep.subr.bf16.mxu0 %v3607_v40  ;;  %v3683_v38 = vld [vmem:[#allocation4 + $0x20] ss:$16 sps:$4 sm:$0xff]   ;;  %v3688_v40 = vld [vmem:[#allocation4 + $0x4] ss:$16 sps:$4 sm:$0xff]  }
  0xc1   :  { %1554 = vmatprep.subr.bf16.mxu1 %v3604_v33  ;;  %v3739_v33 = vld [vmem:[#allocation4 + $0x284] ss:$16 sps:$4 sm:$0xff]  }
  0xc3   :  { %1518 = vmatpush1.bf16.msra.mxu0 %v3605_v42  ;;  %v3743_v42 = vld [vmem:[#allocation4 + $0x260] ss:$16 sps:$4 sm:$0xff]  }
  0xc4   :  { %1555 = vmatpush1.bf16.msra.mxu1 %v3602_v41  ;;  %1519 = vmatprep.subr.bf16.mxu0 %v3613_v44  ;;  %v3686_v41 = vld [vmem:[#allocation4] ss:$16 sps:$4 sm:$0xff]   ;;  %v3691_v44 = vld [vmem:[#allocation4 + $0x1e4] ss:$16 sps:$4 sm:$0xff]  }
  0xc5   :  { %1556 = vmatprep.subr.bf16.mxu1 %v3610_v43  ;;  %v3745_v43 = vld [vmem:[#allocation4 + $0x264] ss:$16 sps:$4 sm:$0xff]  }
  0xc7   :  { %1520 = vmatpush2.bf16.msra.mxu0 %v3611_v46  ;;  %v3749_v46 = vld [vmem:[#allocation4 + $0x240] ss:$16 sps:$4 sm:$0xff]  }
  0xc8   :  { %1557 = vmatpush1.bf16.msra.mxu1 %v3608_v45  ;;  %1521 = vmatprep.subr.bf16.mxu0 %v3619_v48  ;;  %v3689_v45 = vld [vmem:[#allocation4 + $0x1e0] ss:$16 sps:$4 sm:$0xff]   ;;  %v3694_v48 = vld [vmem:[#allocation4 + $0x1c4] ss:$16 sps:$4 sm:$0xff]  }
  0xc9   :  { %1558 = vmatprep.subr.bf16.mxu1 %v3616_v47  ;;  %v3751_v47 = vld [vmem:[#allocation4 + $0x244] ss:$16 sps:$4 sm:$0xff]  }
  0xcb   :  { %1522 = vmatpush2.bf16.msra.mxu0 %v3617_v50  ;;  %v3755_v50 = vld [vmem:[#allocation4 + $0x220] ss:$16 sps:$4 sm:$0xff]  }
  0xcc   :  { %1559 = vmatpush1.bf16.msra.mxu1 %v3614_v49  ;;  %1523 = vmatprep.subr.bf16.mxu0 %v3625_v53  ;;  %v3692_v49 = vld [vmem:[#allocation4 + $0x1c0] ss:$16 sps:$4 sm:$0xff]   ;;  %v3697_v53 = vld [vmem:[#allocation4 + $0x1a4] ss:$16 sps:$4 sm:$0xff]  }
  0xcd   :  { %1560 = vmatprep.subr.bf16.mxu1 %v3622_v52  ;;  %v3757_v52 = vld [vmem:[#allocation4 + $0x224] ss:$16 sps:$4 sm:$0xff]  }
  0xcf   :  { %1524 = vmatpush2.bf16.msra.mxu0 %v3623_v55  ;;  %v3761_v55 = vld [vmem:[#allocation4 + $0x200] ss:$16 sps:$4 sm:$0xff]  }
  0xd0   :  { %1561 = vmatpush2.bf16.msra.mxu1 %v3620_v54  ;;  %1525 = vmatprep.subr.bf16.mxu0 %v3631_v57  ;;  %v3695_v54 = vld [vmem:[#allocation4 + $0x1a0] ss:$16 sps:$4 sm:$0xff]   ;;  %v3700_v57 = vld [vmem:[#allocation4 + $0x184] ss:$16 sps:$4 sm:$0xff]  }
  0xd1   :  { %1562 = vmatprep.subr.bf16.mxu1 %v3628_v56  ;;  %v3763_v56 = vld [vmem:[#allocation4 + $0x204] ss:$16 sps:$4 sm:$0xff]  }
  0xd3   :  { %1526 = vmatpush2.bf16.msra.mxu0 %v3629_v59  ;;  %v3767_v59 = vld [vmem:[#allocation4 + $0x3e0] ss:$16 sps:$4 sm:$0xff]  }
  0xd4   :  { %1563 = vmatpush2.bf16.msra.mxu1 %v3626_v58  ;;  %1527 = vmatprep.subr.bf16.mxu0 %v3637_v61  ;;  %v3698_v58 = vld [vmem:[#allocation4 + $0x180] ss:$16 sps:$4 sm:$0xff]   ;;  %v3703_v61 = vld [vmem:[#allocation4 + $0x164] ss:$16 sps:$4 sm:$0xff]  }
  0xd5   :  { %1564 = vmatprep.subr.bf16.mxu1 %v3634_v60  ;;  %v3769_v60 = vld [vmem:[#allocation4 + $0x3e4] ss:$16 sps:$4 sm:$0xff]  }
  0xd7   :  { %1528 = vmatpush2.bf16.msra.mxu0 %v3635_v63  ;;  %v3773_v63 = vld [vmem:[#allocation4 + $0x3c0] ss:$16 sps:$4 sm:$0xff]  }
  0xd8   :  { %1565 = vmatpush2.bf16.msra.mxu1 %v3632_v62  ;;  %1529 = vmatprep.subr.bf16.mxu0 %v3643_v1  ;;  %v3701_v62 = vld [vmem:[#allocation4 + $0x160] ss:$16 sps:$4 sm:$0xff]   ;;  %v3706_v1 = vld [vmem:[#allocation4 + $0x144] ss:$16 sps:$4 sm:$0xff]  }
  0xd9   :  { %1566 = vmatprep.subr.bf16.mxu1 %v3640_v0  ;;  %v3775_v0 = vld [vmem:[#allocation4 + $0x3c4] ss:$16 sps:$4 sm:$0xff]  }
  0xdb   :  { %1530 = vmatpush2.bf16.msra.mxu0 %v3641_v3  ;;  %v3779_v3 = vld [vmem:[#allocation4 + $0x3a0] ss:$16 sps:$4 sm:$0xff]  }
  0xdc   :  { %1567 = vmatpush2.bf16.msra.mxu1 %v3638_v2  ;;  %1531 = vmatprep.subr.bf16.mxu0 %v3649_v5  ;;  %v3704_v2 = vld [vmem:[#allocation4 + $0x140] ss:$16 sps:$4 sm:$0xff]   ;;  %v3709_v5 = vld [vmem:[#allocation4 + $0x124] ss:$16 sps:$4 sm:$0xff]  }
  0xdd   :  { %1568 = vmatprep.subr.bf16.mxu1 %v3646_v4  ;;  %v3781_v4 = vld [vmem:[#allocation4 + $0x3a4] ss:$16 sps:$4 sm:$0xff]  }
  0xdf   :  { %1532 = vmatpush2.bf16.msra.mxu0 %v3647_v9  ;;  %v3785_v9 = vld [vmem:[#allocation4 + $0x380] ss:$16 sps:$4 sm:$0xff]  }
  0xe0   :  { %1569 = vmatpush2.bf16.msra.mxu1 %v3644_v8  ;;  %1533 = vmatprep.subr.bf16.mxu0 %v3655_v11  ;;  %v3707_v8 = vld [vmem:[#allocation4 + $0x120] ss:$16 sps:$4 sm:$0xff]   ;;  %v3712_v11 = vld [vmem:[#allocation4 + $0x104] ss:$16 sps:$4 sm:$0xff]  }
  0xe1   :  { %1570 = vmatprep.subr.bf16.mxu1 %v3652_v10  ;;  %v3787_v10 = vld [vmem:[#allocation4 + $0x384] ss:$16 sps:$4 sm:$0xff]  }
  0xe3   :  { %1534 = vmatpush2.bf16.msra.mxu0 %v3653_v15 }
  0xe4   :  { %1571 = vmatpush2.bf16.msra.mxu1 %v3650_v12  ;;  %1599 = vmatprep.subr.bf16.mxu0 %v3661_v17  ;;  %v3793_v17 = vld [vmem:[#allocation4 + $0x364] ss:$16 sps:$4 sm:$0xff]  }
  0xe5   :  { %1572 = vmatprep.subr.bf16.mxu1 %v3658_v16  ;;  %v3710_v16 = vld [vmem:[#allocation4 + $0x100] ss:$16 sps:$4 sm:$0xff]  }
  0xe6   :  { %1536 = vmatmul.mubr.bf16.vlgmr.msra.gmra.mxu0 %v4025_v7  ;;  %v3673_v7 = vld [vmem:[#allocation4 + $0xa4] ss:$16 sps:$4 sm:$0xff]  }
  0xe7   :  { %1600 = vmatpush1.bf16.msra.mxu0 %v3659_v19  ;;  %1617 = vmatprep.mubr.bf16.mxu0 %v3961_v13  ;;  %v3676_v13 = vld [vmem:[#allocation4 + $0x84] ss:$16 sps:$4 sm:$0xff]  }
  0xe8   :  { %1573 = vmatpush2.bf16.msra.mxu1 %v3656_v18  ;;  %2424 = vmatprep.subr.bf16.mxu0 %v3667_v21  ;;  %v3791_v21 = vld [vmem:[#allocation4 + $0x360] ss:$16 sps:$4 sm:$0xff]  }
  0xe9   :  { %1574 = vmatprep.subr.bf16.mxu1 %v3664_v20  ;;  %v3715_v20 = vld [vmem:[#allocation4 + $0xec] ss:$16 sps:$4 sm:$0xff]  }
  0xec   :  { %1575 = vmatpush2.bf16.msra.mxu1 %v3662_v22 }
  0xed   :  { %2465 = vmatprep.subr.bf16.mxu1 %v3721_v30 }
  0xee   :  { %3150 = vmatmul.mubr.msk.bf16.vlgmr.msra.gmra.mxu0 %vm1294_vm0, %v3889_v26 }
  0xef   :  { %1577 = vmatmul.mubr.bf16.vlgmr.msra.gmra.mxu1 %v4047_v14  ;;  %2425 = vmatpush1.bf16.msra.mxu0 %v3665_v23  ;;  %v3677_v14 = vld [vmem:[#allocation4 + $0x60] ss:$16 sps:$4 sm:$0xff]  }
  0xf0   :  { %2426 = vmatprep.subr.bf16.mxu0 %v3670_v24  ;;  %2466 = vmatpush1.bf16.msra.mxu1 %v3719_v29  ;;  %v3799_v24 = vld [vmem:[#allocation4 + $0x344] ss:$16 sps:$4 sm:$0xff]   ;;  %v3803_v29 = vld [vmem:[#allocation4 + $0x320] ss:$16 sps:$4 sm:$0xff]  }
  0xf1   :  { %2467 = vmatprep.subr.bf16.mxu1 %v3727_v51  ;;  %v3811_v51 = vld [vmem:[#allocation4 + $0x2ec] ss:$16 sps:$4 sm:$0xff]  }
  0xf3   :  { %2427 = vmatpush1.bf16.msra.mxu0 %v3668_v25 }
  0xf4   :  { %2428 = vmatprep.subr.bf16.mxu0 %v3673_v7  ;;  %2468 = vmatpush1.bf16.msra.mxu1 %v3725_v32  ;;  %v3797_v7 = vld [vmem:[#allocation4 + $0x340] ss:$16 sps:$4 sm:$0xff]  }
  0xf5   :  { %2469 = vmatprep.subr.bf16.mxu1 %v3733_v36  ;;  %v3806_v32 = vld [vmem:[#allocation4 + $0x300] ss:$16 sps:$4 sm:$0xff]  }
  0xf6   :  { %v4066_v36 = vld [vmem:[%s4116_s2] sm:$0xf] }
  0xf7   :  { %2429 = vmatpush1.bf16.msra.mxu0 %v3671_v27 }
  0xf8   :  { %2430 = vmatprep.subr.bf16.mxu0 %v3676_v13  ;;  %2470 = vmatpush1.bf16.msra.mxu1 %v3731_v6  ;;  %v3805_v13 = vld [vmem:[#allocation4 + $0x324] ss:$16 sps:$4 sm:$0xff]  }
  0xf9   :  { %2471 = vmatprep.subr.bf16.mxu1 %v3739_v33 }
  0xfb   :  { %2431 = vmatpush1.bf16.msra.mxu0 %v3674_v28 }
  0xfc   :  { %2432 = vmatprep.subr.bf16.mxu0 %v3679_v31  ;;  %2472 = vmatpush1.bf16.msra.mxu1 %v3737_v39  ;;  %v3808_v31 = vld [vmem:[#allocation4 + $0x304] ss:$16 sps:$4 sm:$0xff]  }
  0xfd   :  { %2473 = vmatprep.subr.bf16.mxu1 %v3745_v43 }
  0xff   :  { %2433 = vmatpush1.bf16.msra.mxu0 %v3677_v14 }
 0x100   :  { %2434 = vmatprep.subr.bf16.mxu0 %v3682_v34  ;;  %2474 = vmatpush1.bf16.msra.mxu1 %v3743_v42  ;;  %v270_v34 = vlaneseq }
 0x101   :  { %2475 = vmatprep.subr.bf16.mxu1 %v3751_v47 }
 0x103   :  { %2435 = vmatpush1.bf16.msra.mxu0 %v3680_v35  ;;  %v4060_v35 = vshrl.u32 %v270_v34, 7 }
 0x104   :  { %2436 = vmatprep.subr.bf16.mxu0 %v3685_v37  ;;  %2476 = vmatpush1.bf16.msra.mxu1 %v3749_v46 }
 0x105   :  { %2477 = vmatprep.subr.bf16.mxu1 %v3757_v52  ;;  %v272_v6 = vsub.s32 0, %v4060_v35  ;;  %v276_v37 = vsub.s32 1, %v4060_v35 }
 0x107   :  { %2437 = vmatpush1.bf16.msra.mxu0 %v3683_v38  ;;  %v273_v38 = vrot.slane %v4066_v36, %v272_v6  ;;  %v277_v39 = vrot.slane %v4066_v36, %v276_v37 }
 0x108   :  { %2438 = vmatprep.subr.bf16.mxu0 %v3688_v40  ;;  %2478 = vmatpush1.bf16.msra.mxu1 %v3755_v50 }
 0x109   :  { %2479 = vmatprep.subr.bf16.mxu1 %v3763_v56  ;;  %v3713_v56 = vld [vmem:[#allocation4 + $0xe8] ss:$16 sps:$4 sm:$0xff]  }
 0x10b   :  { %2439 = vmatpush1.bf16.msra.mxu0 %v3686_v41 }
 0x10c   :  { %2440 = vmatprep.subr.bf16.mxu0 %v3691_v44  ;;  %2480 = vmatpush1.bf16.msra.mxu1 %v3761_v55 }
 0x10d   :  { %2481 = vmatprep.subr.bf16.mxu1 %v3769_v60 }
 0x10f   :  { %2441 = vmatpush2.bf16.msra.mxu0 %v3689_v45 }
 0x110   :  { %2442 = vmatprep.subr.bf16.mxu0 %v3694_v48  ;;  %2482 = vmatpush2.bf16.msra.mxu1 %v3767_v59  ;;  %v3718_v59 = vld [vmem:[#allocation4 + $0xcc] ss:$16 sps:$4 sm:$0xff]  }
 0x111   :  { %2483 = vmatprep.subr.bf16.mxu1 %v3775_v0  ;;  %v3722_v0 = vld [vmem:[#allocation4 + $0xa8] ss:$16 sps:$4 sm:$0xff]  }
 0x113   :  { %2443 = vmatpush2.bf16.msra.mxu0 %v3692_v49 }
 0x114   :  { %2444 = vmatprep.subr.bf16.mxu0 %v3697_v53  ;;  %2484 = vmatpush2.bf16.msra.mxu1 %v3773_v63  ;;  %v3724_v63 = vld [vmem:[#allocation4 + $0xac] ss:$16 sps:$4 sm:$0xff]  }
 0x115   :  { %2485 = vmatprep.subr.bf16.mxu1 %v3781_v4  ;;  %v3734_v4 = vld [vmem:[#allocation4 + $0x68] ss:$16 sps:$4 sm:$0xff]  }
 0x117   :  { %2445 = vmatpush2.bf16.msra.mxu0 %v3695_v54 }
 0x118   :  { %2446 = vmatprep.subr.bf16.mxu0 %v3700_v57  ;;  %2486 = vmatpush2.bf16.msra.mxu1 %v3779_v3  ;;  %v3736_v3 = vld [vmem:[#allocation4 + $0x6c] ss:$16 sps:$4 sm:$0xff]  }
 0x119   :  { %2487 = vmatprep.subr.bf16.mxu1 %v3787_v10  ;;  %v3746_v10 = vld [vmem:[#allocation4 + $0x28] ss:$16 sps:$4 sm:$0xff]  }
 0x11b   :  { %2447 = vmatpush2.bf16.msra.mxu0 %v3698_v58 }
 0x11c   :  { %2448 = vmatprep.subr.bf16.mxu0 %v3703_v61  ;;  %2488 = vmatpush2.bf16.msra.mxu1 %v3785_v9  ;;  %v3716_v61 = vld [vmem:[#allocation4 + $0xc8] ss:$16 sps:$4 sm:$0xff]   ;;  %v3748_v9 = vld [vmem:[#allocation4 + $0x2c] ss:$16 sps:$4 sm:$0xff]  }
 0x11d   :  { %2489 = vmatprep.subr.bf16.mxu1 %v3793_v17  ;;  %v3766_v17 = vld [vmem:[#allocation4 + $0x1cc] ss:$16 sps:$4 sm:$0xff]  }
 0x11f   :  { %2449 = vmatpush2.bf16.msra.mxu0 %v3701_v62 }
 0x120   :  { %2450 = vmatprep.subr.bf16.mxu0 %v3706_v1  ;;  %2490 = vmatpush2.bf16.msra.mxu1 %v3791_v21  ;;  %v3730_v1 = vld [vmem:[#allocation4 + $0x8c] ss:$16 sps:$4 sm:$0xff]  }
 0x121   :  { %2491 = vmatprep.subr.bf16.mxu1 %v3799_v24  ;;  %v3778_v21 = vld [vmem:[#allocation4 + $0x18c] ss:$16 sps:$4 sm:$0xff]   ;;  %v3782_v24 = vld [vmem:[#allocation4 + $0x168] ss:$16 sps:$4 sm:$0xff]  }
 0x123   :  { %2451 = vmatpush2.bf16.msra.mxu0 %v3704_v2  ;;  %v3728_v2 = vld [vmem:[#allocation4 + $0x88] ss:$16 sps:$4 sm:$0xff]  }
 0x124   :  { %2452 = vmatprep.subr.bf16.mxu0 %v3709_v5  ;;  %2492 = vmatpush2.bf16.msra.mxu1 %v3797_v7  ;;  %v3742_v5 = vld [vmem:[#allocation4 + $0x4c] ss:$16 sps:$4 sm:$0xff]   ;;  %v3788_v7 = vld [vmem:[#allocation4 + $0x148] ss:$16 sps:$4 sm:$0xff]  }
 0x125   :  { %2493 = vmatprep.subr.bf16.mxu1 %v3805_v13  ;;  %v284_v13 = vsub.s32 3, %v4060_v35 }
 0x126   :  { %v1332_v12 = vpop.f32.mrf.mxu0 }
 0x127   :  { %v1373_v15 = vpop.f32.mrf.mxu1  ;;  %2453 = vmatpush2.bf16.msra.mxu0 %v3707_v8  ;;  %v1333_v33 = vadd.f32 %v1332_v12, %v273_v38  ;;  %v3740_v8 = vld [vmem:[#allocation4 + $0x48] ss:$16 sps:$4 sm:$0xff]  }
 0x128   :  { %v1334_v18 = vpop.f32.mrf.mxu0  ;;  %2454 = vmatprep.subr.bf16.mxu0 %v3712_v11  ;;  %2494 = vmatpush2.bf16.msra.mxu1 %v3803_v29  ;;  %v3754_v11 = vld [vmem:[#allocation4 + $0xc] ss:$16 sps:$4 sm:$0xff]   ;;  %v3752_v12 = vld [vmem:[#allocation4 + $0x8] ss:$16 sps:$4 sm:$0xff]  }
 0x129   :  { %v1375_v19 = vpop.f32.mrf.mxu1  ;;  %2495 = vmatprep.subr.bf16.mxu1 %v3808_v31  ;;  %v1335_v40 = vadd.f32 %v1334_v18, %v277_v39  ;;  %v1374_v41 = vadd.f32 %v1373_v15, %v1333_v33  ;;  %v3760_v15 = vld [vmem:[#allocation4 + $0x1ec] ss:$16 sps:$4 sm:$0xff]   ;;  %v3764_v18 = vld [vmem:[#allocation4 + $0x1c8] ss:$16 sps:$4 sm:$0xff]  }
 0x12a   :  { %v1336_v22 = vpop.f32.mrf.mxu0  ;;  %v3800_v38 = vld [vmem:[#allocation4 + $0x108] ss:$16 sps:$4 sm:$0xff]  }
 0x12b   :  { %v1377_v23 = vpop.f32.mrf.mxu1  ;;  %2455 = vmatpush2.bf16.msra.mxu0 %v3710_v16  ;;  %v1376_v43 = vadd.f32 %v1375_v19, %v1335_v40  ;;  %v3758_v16 = vld [vmem:[#allocation4 + $0x1e8] ss:$16 sps:$4 sm:$0xff]   ;;  %v3772_v19 = vld [vmem:[#allocation4 + $0x1ac] ss:$16 sps:$4 sm:$0xff]  }
 0x12c   :  { %v1337_v25 = vpop.f32.mrf.mxu0  ;;  %2506 = vmatprep.subr.bf16.mxu0 %v3715_v20  ;;  %2496 = vmatpush2.bf16.msra.mxu1 %v3806_v32  ;;  %v3770_v20 = vld [vmem:[#allocation4 + $0x1a8] ss:$16 sps:$4 sm:$0xff]   ;;  %v3784_v23 = vld [vmem:[#allocation4 + $0x16c] ss:$16 sps:$4 sm:$0xff]   ;;  %v285_v32 = vrot.slane %v4066_v36, %v284_v13 }
 0x12d   :  { %v1378_v26 = vpop.f32.mrf.mxu1  ;;  %2547 = vmatprep.subr.bf16.mxu1 %v3811_v51  ;;  %v3776_v22 = vld [vmem:[#allocation4 + $0x188] ss:$16 sps:$4 sm:$0xff]   ;;  %v3790_v25 = vld [vmem:[#allocation4 + $0x14c] ss:$16 sps:$4 sm:$0xff]  }
 0x12e   :  { %v280_v26 = vsub.s32 2, %v4060_v35 }
 0x12f   :  { %v1455_v27 = vpop.f32.mrf.mxu1 }
 0x130   :  { %v281_v29 = vrot.slane %v4066_v36, %v280_v26 }
 0x131   :  { %v1457_v28 = vpop.f32.mrf.mxu1 }
 0x133   :  { %v1459_v30 = vpop.f32.mrf.mxu1 }
 0x134   :  { %v3794_v30 = vld [vmem:[#allocation4 + $0x128] ss:$16 sps:$4 sm:$0xff]  }
 0x135   :  { %v1460_v14 = vpop.f32.mrf.mxu1 }
 0x136   :  { %v3802_v14 = vld [vmem:[#allocation4 + $0x10c] ss:$16 sps:$4 sm:$0xff]  }
 0x166   :  { %v1414_v42 = vpop.f32.mrf.mxu0 }
 0x167   :  { %v1415_v44 = vadd.f32 %v1414_v42, %v1374_v41 }
 0x168   :  { %v1416_v45 = vpop.f32.mrf.mxu0 }
 0x169   :  { %v1456_v46 = vadd.f32 %v1455_v27, %v1415_v44  ;;  %v1417_v47 = vadd.f32 %v1416_v45, %v1376_v43  ;;  %v3796_v27 = vld [vmem:[#allocation4 + $0x12c] ss:$16 sps:$4 sm:$0xff]  }
 0x16a   :  { %v1418_v48 = vpop.f32.mrf.mxu0 }
 0x16b   :  { %v1458_v49 = vadd.f32 %v1457_v28, %v1417_v47  ;;  %v1626_v50 = vmax.f32 %v1456_v46, 0.0 }
 0x16c   :  { %v1419_v52 = vpop.f32.mrf.mxu0 }
 0x16d   :  { %v1627_v53 = vmax.f32 %v1458_v49, 0.0  ;;  %v4077_v57 = vpack.c.bf16 %v1626_v50, %v1626_v50 }
 0x16f   :  { %v4075_v54 = vpop.f32.mrf.mxu1  ;;  %v1631_v55 = vpack.c.bf16 %v1627_v53, %v1627_v53 }
 0x170   :  { %v1497_v34 = vadd.f32 %v4075_v54, %v281_v29  ;;  %v3847_v29 = vld [vmem:[#allocation4 + $0x36c] ss:$16 sps:$4 sm:$0xff]  }
 0x171   :  { %v4079_v58 = vpop.f32.mrf.mxu1  ;;  %2456 = vmatprep.mubr.bf16.mxu0 %v1631_v55 }
 0x172   :  { %2457 = vmatmul.mubr.bf16.vlgmr.msra.gmra.mxu0 %v4077_v57  ;;  %v1499_v33 = vadd.f32 %v4079_v58, %v285_v32  ;;  %v3809_v58 = vld [vmem:[#allocation4 + $0x2e8] ss:$16 sps:$4 sm:$0xff]   ;;  %v3853_v32 = vld [vmem:[#allocation4 + $0x32c] ss:$16 sps:$4 sm:$0xff]  }
 0x173   :  { %v1500_v60 = vpop.f32.mrf.mxu1  ;;  %2507 = vmatpush1.bf16.msra.mxu0 %v3713_v56  ;;  %2538 = vmatprep.mubr.bf16.mxu0 %v1631_v55 }
 0x174   :  { %2508 = vmatprep.subr.bf16.mxu0 %v3718_v59  ;;  %v3814_v60 = vld [vmem:[#allocation4 + $0x2cc] ss:$16 sps:$4 sm:$0xff]  }
 0x175   :  { %v1501_v62 = vpop.f32.mrf.mxu1 }
 0x176   :  { %v3858_v62 = vld [vmem:[#allocation6 + $0x38] sm:$0xff]  }
 0x177   :  { %2509 = vmatpush1.bf16.msra.mxu0 %v3716_v61  ;;  %v3857_v61 = vld [vmem:[#allocation6 + $0x78] sm:$0xff]  }
 0x178   :  { %2510 = vmatprep.subr.bf16.mxu0 %v3724_v63  ;;  %v3859_v63 = vld [vmem:[#allocation6 + $0x70] sm:$0xff]  }
 0x17b   :  { %2511 = vmatpush1.bf16.msra.mxu0 %v3722_v0  ;;  %v3817_v0 = vld [vmem:[#allocation4 + $0x2ac] ss:$16 sps:$4 sm:$0xff]  }
 0x17c   :  { %2512 = vmatprep.subr.bf16.mxu0 %v3730_v1  ;;  %v3860_v1 = vld [vmem:[#allocation6 + $0x30] sm:$0xff]  }
 0x17f   :  { %2513 = vmatpush1.bf16.msra.mxu0 %v3728_v2  ;;  %v3861_v2 = vld [vmem:[#allocation6 + $0x68] sm:$0xff]  }
 0x180   :  { %2514 = vmatprep.subr.bf16.mxu0 %v3736_v3  ;;  %v3815_v3 = vld [vmem:[#allocation4 + $0x2a8] ss:$16 sps:$4 sm:$0xff]  }
 0x183   :  { %2515 = vmatpush1.bf16.msra.mxu0 %v3734_v4  ;;  %v3820_v4 = vld [vmem:[#allocation4 + $0x28c] ss:$16 sps:$4 sm:$0xff]  }
 0x184   :  { %2516 = vmatprep.subr.bf16.mxu0 %v3742_v5  ;;  %v3862_v5 = vld [vmem:[#allocation6 + $0x28] sm:$0xff]  }
 0x187   :  { %2517 = vmatpush1.bf16.msra.mxu0 %v3740_v8  ;;  %v3863_v8 = vld [vmem:[#allocation6 + $0x60] sm:$0xff]  }
 0x188   :  { %2518 = vmatprep.subr.bf16.mxu0 %v3748_v9  ;;  %v3818_v9 = vld [vmem:[#allocation4 + $0x288] ss:$16 sps:$4 sm:$0xff]  }
 0x18b   :  { %2519 = vmatpush1.bf16.msra.mxu0 %v3746_v10  ;;  %v3823_v10 = vld [vmem:[#allocation4 + $0x26c] ss:$16 sps:$4 sm:$0xff]  }
 0x18c   :  { %2520 = vmatprep.subr.bf16.mxu0 %v3754_v11  ;;  %v3864_v11 = vld [vmem:[#allocation6 + $0x20] sm:$0xff]  }
 0x18f   :  { %2521 = vmatpush1.bf16.msra.mxu0 %v3752_v12  ;;  %v3821_v12 = vld [vmem:[#allocation4 + $0x268] ss:$16 sps:$4 sm:$0xff]  }
 0x190   :  { %2522 = vmatprep.subr.bf16.mxu0 %v3760_v15  ;;  %v3826_v15 = vld [vmem:[#allocation4 + $0x24c] ss:$16 sps:$4 sm:$0xff]  }
 0x193   :  { %2523 = vmatpush2.bf16.msra.mxu0 %v3758_v16  ;;  %v3824_v16 = vld [vmem:[#allocation4 + $0x248] ss:$16 sps:$4 sm:$0xff]  }
 0x194   :  { %2524 = vmatprep.subr.bf16.mxu0 %v3766_v17  ;;  %v3829_v17 = vld [vmem:[#allocation4 + $0x22c] ss:$16 sps:$4 sm:$0xff]  }
 0x197   :  { %2525 = vmatpush2.bf16.msra.mxu0 %v3764_v18  ;;  %v3827_v18 = vld [vmem:[#allocation4 + $0x228] ss:$16 sps:$4 sm:$0xff]  }
 0x198   :  { %2526 = vmatprep.subr.bf16.mxu0 %v3772_v19  ;;  %v3832_v19 = vld [vmem:[#allocation4 + $0x20c] ss:$16 sps:$4 sm:$0xff]  }
 0x19b   :  { %2527 = vmatpush2.bf16.msra.mxu0 %v3770_v20  ;;  %v3830_v20 = vld [vmem:[#allocation4 + $0x208] ss:$16 sps:$4 sm:$0xff]  }
 0x19c   :  { %2528 = vmatprep.subr.bf16.mxu0 %v3778_v21  ;;  %v3835_v21 = vld [vmem:[#allocation4 + $0x3ec] ss:$16 sps:$4 sm:$0xff]  }
 0x19f   :  { %2529 = vmatpush2.bf16.msra.mxu0 %v3776_v22  ;;  %v3833_v22 = vld [vmem:[#allocation4 + $0x3e8] ss:$16 sps:$4 sm:$0xff]  }
 0x1a0   :  { %2530 = vmatprep.subr.bf16.mxu0 %v3784_v23  ;;  %v3838_v23 = vld [vmem:[#allocation4 + $0x3cc] ss:$16 sps:$4 sm:$0xff]  }
 0x1a3   :  { %2531 = vmatpush2.bf16.msra.mxu0 %v3782_v24  ;;  %v3836_v24 = vld [vmem:[#allocation4 + $0x3c8] ss:$16 sps:$4 sm:$0xff]  }
 0x1a4   :  { %2532 = vmatprep.subr.bf16.mxu0 %v3790_v25  ;;  %v3841_v25 = vld [vmem:[#allocation4 + $0x3ac] ss:$16 sps:$4 sm:$0xff]  }
 0x1a6   :  { %v1537_v28 = vpop.f32.mrf.mxu0 }
 0x1a7   :  { %2533 = vmatpush2.bf16.msra.mxu0 %v3788_v7  ;;  %v1538_v40 = vadd.f32 %v1537_v28, %v1497_v34  ;;  %v3839_v7 = vld [vmem:[#allocation4 + $0x3a8] ss:$16 sps:$4 sm:$0xff]   ;;  %v3856_v34 = vld [vmem:[#allocation4 + $0x30c] ss:$16 sps:$4 sm:$0xff]  }
 0x1a8   :  { %v1539_v31 = vpop.f32.mrf.mxu0  ;;  %2534 = vmatprep.subr.bf16.mxu0 %v3796_v27  ;;  %v3844_v27 = vld [vmem:[#allocation4 + $0x38c] ss:$16 sps:$4 sm:$0xff]   ;;  %v3842_v28 = vld [vmem:[#allocation4 + $0x388] ss:$16 sps:$4 sm:$0xff]  }
 0x1a9   :  { %v1540_v43 = vadd.f32 %v1539_v31, %v1499_v33  ;;  %v3850_v31 = vld [vmem:[#allocation4 + $0x34c] ss:$16 sps:$4 sm:$0xff]  }
 0x1aa   :  { %v1541_v51 = vpop.f32.mrf.mxu0  ;;  %v3866_v33 = vld [vmem:[#allocation6 + $0x18] sm:$0xff]  }
 0x1ab   :  { %2535 = vmatpush2.bf16.msra.mxu0 %v3794_v30  ;;  %v3845_v30 = vld [vmem:[#allocation4 + $0x368] ss:$16 sps:$4 sm:$0xff]  }
 0x1ac   :  { %v1542_v39 = vpop.f32.mrf.mxu0  ;;  %2536 = vmatprep.subr.bf16.mxu0 %v3802_v14  ;;  %v3848_v14 = vld [vmem:[#allocation4 + $0x348] ss:$16 sps:$4 sm:$0xff]  }
 0x1ad   :  { %v3851_v51 = vld [vmem:[#allocation4 + $0x328] ss:$16 sps:$4 sm:$0xff]  }
 0x1ae   :  { %v1619_v42 = vpop.f32.mrf.mxu0  ;;  %v3865_v39 = vld [vmem:[#allocation6 + $0x58] sm:$0xff]  }
 0x1af   :  { %v1578_v41 = vpop.f32.mrf.mxu1  ;;  %2537 = vmatpush2.bf16.msra.mxu0 %v3800_v38  ;;  %v3854_v38 = vld [vmem:[#allocation4 + $0x308] ss:$16 sps:$4 sm:$0xff]  }
 0x1b0   :  { %v1579_v44 = vadd.f32 %v1578_v41, %v1538_v40  ;;  %v1621_v46 = vpop.f32.mrf.mxu0  ;;  %3312 = vmatprep.subr.bf16.mxu0 %v3857_v61  ;;  %v3867_v40 = vld [vmem:[#allocation6 + $0x50] sm:$0xff]  }
 0x1b1   :  { %v1580_v45 = vpop.f32.mrf.mxu1  ;;  %v3868_v41 = vld [vmem:[#allocation6 + $0x10] sm:$0xff]  }
 0x1b2   :  { %v1620_v47 = vadd.f32 %v1619_v42, %v1579_v44  ;;  %v1581_v48 = vadd.f32 %v1580_v45, %v1540_v43  ;;  %2539 = vmatmul.mubr.bf16.vlgmr.msra.gmra.mxu0 %v4077_v57  ;;  %v1623_v49 = vpop.f32.mrf.mxu0  ;;  %v3812_v57 = vld [vmem:[#allocation4 + $0x2c8] ss:$16 sps:$4 sm:$0xff]   ;;  %v3871_v44 = vld [vmem:[#allocation6 + $0x40] sm:$0xff]  }
 0x1b3   :  { %v1582_v36 = vpop.f32.mrf.mxu1  ;;  %3313 = vmatpush3.bf16.msra.mxu0 %v3858_v62  ;;  %v3869_v42 = vld [vmem:[#allocation6 + $0x48] sm:$0xff]   ;;  %v3872_v45 = vld [vmem:[#allocation6] sm:$0xff]  }
 0x1b4   :  { %v1622_v50 = vadd.f32 %v1621_v46, %v1581_v48  ;;  %v1628_v52 = vmax.f32 %v1620_v47, 0.0  ;;  %v1624_v54 = vpop.f32.mrf.mxu0  ;;  %3314 = vmatprep.subr.bf16.mxu0 %v3859_v63  ;;  %v3870_v43 = vld [vmem:[#allocation6 + $0x8] sm:$0xff]   ;;  %v3873_v46 = vld [vmem:[#allocation6 + $0xf8] sm:$0xff]   ;;  %v3875_v48 = vld [vmem:[#allocation6 + $0xf0] sm:$0xff]  }
 0x1b5   :  { %v1583_v53 = vpop.f32.mrf.mxu1  ;;  %v3874_v47 = vld [vmem:[#allocation6 + $0xb8] sm:$0xff]   ;;  %v3876_v36 = vld [vmem:[#allocation6 + $0xb0] sm:$0xff]   ;;  %v3877_v49 = vld [vmem:[#allocation6 + $0xe8] sm:$0xff]  }
 0x1b6   :  { %v1629_v55 = vmax.f32 %v1622_v50, 0.0  ;;  %v4093_v59 = vpack.c.bf16 %v1628_v52, %v1628_v52  ;;  %v3878_v50 = vld [vmem:[#allocation6 + $0xa8] sm:$0xff]   ;;  %v3879_v52 = vld [vmem:[#allocation6 + $0xe0] sm:$0xff]   ;;  %v3881_v54 = vld [vmem:[#allocation6 + $0xd8] sm:$0xff]  }
 0x1b7   :  { %3315 = vmatpush3.bf16.msra.mxu0 %v3860_v1  ;;  %v3880_v53 = vld [vmem:[#allocation6 + $0xa0] sm:$0xff]   ;;  %v3885_v63 = vld [vmem:[#allocation6 + $0xc8] sm:$0xff]  }
 0x1b8   :  { %v1633_v56 = vpack.c.bf16 %v1629_v55, %v1629_v55  ;;  %3316 = vmatprep.subr.bf16.mxu0 %v3861_v2  ;;  %v3882_v55 = vld [vmem:[#allocation6 + $0x98] sm:$0xff]   ;;  %v3888_v1 = vld [vmem:[#allocation6 + $0x80] sm:$0xff]  }
 0x1b9   :  { %v1762_v2 = vld [vmem:[%s4118_s4] sm:$0xf] }
 0x1ba   :  { %2497 = vmatprep.mubr.bf16.mxu1 %v1633_v56 }
 0x1bb   :  { %2498 = vmatmul.mubr.bf16.vlgmr.msra.gmra.mxu1 %v4093_v59  ;;  %3317 = vmatpush3.bf16.msra.mxu0 %v3862_v5  ;;  %v1767_v5 = vrot.slane %v1762_v2, %v272_v6  ;;  %v1775_v6 = vrot.slane %v1762_v2, %v280_v26 }
 0x1bc   :  { %2548 = vmatpush1.bf16.msra.mxu1 %v3809_v58  ;;  %2579 = vmatprep.mubr.bf16.mxu1 %v1633_v56  ;;  %v3883_v56 = vld [vmem:[#allocation6 + $0xd0] sm:$0xff]  }
 0x1bd   :  { %2549 = vmatprep.subr.bf16.mxu1 %v3814_v60  ;;  %3318 = vmatprep.subr.bf16.mxu0 %v3863_v8  ;;  %v3884_v58 = vld [vmem:[#allocation6 + $0x90] sm:$0xff]  }
 0x1bf   :  { %3319 = vmatpush3.bf16.msra.mxu0 %v3864_v11 }
 0x1c0   :  { %2550 = vmatpush1.bf16.msra.mxu1 %v3812_v57  ;;  %3320 = vmatprep.subr.bf16.mxu0 %v3865_v39  ;;  %v3886_v57 = vld [vmem:[#allocation6 + $0x88] sm:$0xff]  }
 0x1c1   :  { %2551 = vmatprep.subr.bf16.mxu1 %v3817_v0  ;;  %v3887_v0 = vld [vmem:[#allocation6 + $0xc0] sm:$0xff]  }
 0x1c3   :  { %3321 = vmatpush3.bf16.msra.mxu0 %v3866_v33 }
 0x1c4   :  { %2552 = vmatpush1.bf16.msra.mxu1 %v3815_v3  ;;  %3322 = vmatprep.subr.bf16.mxu0 %v3867_v40 }
 0x1c5   :  { %2553 = vmatprep.subr.bf16.mxu1 %v3820_v4 }
 0x1c7   :  { %3323 = vmatpush3.bf16.msra.mxu0 %v3868_v41 }
 0x1c8   :  { %2554 = vmatpush1.bf16.msra.mxu1 %v3818_v9  ;;  %3324 = vmatprep.subr.bf16.mxu0 %v3869_v42  ;;  %v1771_v9 = vrot.slane %v1762_v2, %v276_v37  ;;  %v1779_v37 = vrot.slane %v1762_v2, %v284_v13  ;;  %v3279_v13 = vld [vmem:[%s4120_s6] ss:$0 sm:$0xff] }
 0x1c9   :  { %2555 = vmatprep.subr.bf16.mxu1 %v3823_v10 }
 0x1cb   :  { %3325 = vmatpush3.bf16.msra.mxu0 %v3870_v43 }
 0x1cc   :  { %2556 = vmatpush1.bf16.msra.mxu1 %v3821_v12  ;;  %3326 = vmatprep.subr.bf16.mxu0 %v3871_v44 }
 0x1cd   :  { %2557 = vmatprep.subr.bf16.mxu1 %v3826_v15 }
 0x1cf   :  { %3327 = vmatpush3.bf16.msra.mxu0 %v3872_v45 }
 0x1d0   :  { %2558 = vmatpush1.bf16.msra.mxu1 %v3824_v16 }
 0x1d1   :  { %2559 = vmatprep.subr.bf16.mxu1 %v3829_v17 }
 0x1d4   :  { %2560 = vmatpush1.bf16.msra.mxu1 %v3827_v18 }
 0x1d5   :  { %2561 = vmatprep.subr.bf16.mxu1 %v3832_v19 }
 0x1d8   :  { %2562 = vmatpush1.bf16.msra.mxu1 %v3830_v20 }
 0x1d9   :  { %2563 = vmatprep.subr.bf16.mxu1 %v3835_v21 }
 0x1dc   :  { %2564 = vmatpush2.bf16.msra.mxu1 %v3833_v22 }
 0x1dd   :  { %2565 = vmatprep.subr.bf16.mxu1 %v3838_v23 }
 0x1e0   :  { %2566 = vmatpush2.bf16.msra.mxu1 %v3836_v24 }
 0x1e1   :  { %2567 = vmatprep.subr.bf16.mxu1 %v3841_v25 }
 0x1e4   :  { %2568 = vmatpush2.bf16.msra.mxu1 %v3839_v7 }
 0x1e5   :  { %2569 = vmatprep.subr.bf16.mxu1 %v3844_v27 }
 0x1e8   :  { %2570 = vmatpush2.bf16.msra.mxu1 %v3842_v28 }
 0x1e9   :  { %2571 = vmatprep.subr.bf16.mxu1 %v3847_v29 }
 0x1ec   :  { %2572 = vmatpush2.bf16.msra.mxu1 %v3845_v30 }
 0x1ed   :  { %2573 = vmatprep.subr.bf16.mxu1 %v3850_v31 }
 0x1f0   :  { %2574 = vmatpush2.bf16.msra.mxu1 %v3848_v14 }
 0x1f1   :  { %2575 = vmatprep.subr.bf16.mxu1 %v3853_v32 }
 0x1f4   :  { %2576 = vmatpush2.bf16.msra.mxu1 %v3851_v51 }
 0x1f5   :  { %2577 = vmatprep.subr.bf16.mxu1 %v3856_v34 }
 0x1f8   :  { %2578 = vmatpush2.bf16.msra.mxu1 %v3854_v38 }
 0x1f9   :  { %3334 = vmatprep.subr.bf16.mxu1 %v3873_v46 }
 0x1fb   :  { %2580 = vmatmul.mubr.bf16.vlgmr.msra.gmra.mxu1 %v4093_v59 }
 0x1fc   :  { %3335 = vmatpush3.bf16.msra.mxu1 %v3874_v47 }
 0x1fd   :  { %3336 = vmatprep.subr.bf16.mxu1 %v3875_v48 }
 0x200   :  { %3337 = vmatpush3.bf16.msra.mxu1 %v3876_v36 }
 0x201   :  { %3338 = vmatprep.subr.bf16.mxu1 %v3877_v49 }
 0x204   :  { %3339 = vmatpush3.bf16.msra.mxu1 %v3878_v50 }
 0x205   :  { %3340 = vmatprep.subr.bf16.mxu1 %v3879_v52 }
 0x208   :  { %3341 = vmatpush3.bf16.msra.mxu1 %v3880_v53 }
 0x209   :  { %3342 = vmatprep.subr.bf16.mxu1 %v3881_v54 }
 0x20c   :  { %3343 = vmatpush3.bf16.msra.mxu1 %v3882_v55 }
 0x20d   :  { %3344 = vmatprep.subr.bf16.mxu1 %v3883_v56 }
 0x210   :  { %3345 = vmatpush3.bf16.msra.mxu1 %v3884_v58 }
 0x211   :  { %3346 = vmatprep.subr.bf16.mxu1 %v3885_v63 }
 0x214   :  { %3347 = vmatpush3.bf16.msra.mxu1 %v3886_v57 }
 0x215   :  { %3348 = vmatprep.subr.bf16.mxu1 %v3887_v0 }
 0x218   :  { %3349 = vmatpush3.bf16.msra.mxu1 %v3888_v1 }
 0x232   :  { %v2458_v59 = vpop.f32.mrf.mxu0 }
 0x233   :  { %v2459_v11 = vadd.f32 %v2458_v59, %v1767_v5 }
 0x234   :  { %v2460_v60 = vpop.f32.mrf.mxu0 }
 0x235   :  { %v2461_v15 = vadd.f32 %v2460_v60, %v1771_v9 }
 0x236   :  { %v2462_v61 = vpop.f32.mrf.mxu0 }
 0x238   :  { %v2463_v62 = vpop.f32.mrf.mxu0 }
 0x272   :  { %v2540_v3 = vpop.f32.mrf.mxu0 }
 0x273   :  { %v2541_v25 = vadd.f32 %v2540_v3, %v1775_v6 }
 0x274   :  { %v2542_v4 = vpop.f32.mrf.mxu0 }
 0x275   :  { %v2543_v27 = vadd.f32 %v2542_v4, %v1779_v37 }
 0x276   :  { %v2544_v8 = vpop.f32.mrf.mxu0 }
 0x278   :  { %v2545_v10 = vpop.f32.mrf.mxu0 }
 0x27b   :  { %v2499_v12 = vpop.f32.mrf.mxu1 }
 0x27c   :  { %v2500_v16 = vadd.f32 %v2499_v12, %v2459_v11 }
 0x27d   :  { %v2501_v17 = vpop.f32.mrf.mxu1 }
 0x27e   :  { %v2502_v18 = vadd.f32 %v2501_v17, %v2461_v15  ;;  %v2588_v19 = vmax.f32 %v2500_v16, 0.0 }
 0x27f   :  { %v2503_v20 = vpop.f32.mrf.mxu1 }
 0x280   :  { %v2589_v21 = vmax.f32 %v2502_v18, 0.0  ;;  %v2592_v24 = vpack.c.bf16 %v2588_v19, %v2588_v19 }
 0x281   :  { %v2504_v22 = vpop.f32.mrf.mxu1 }
 0x282   :  { %v2593_v23 = vpack.c.bf16 %v2589_v21, %v2589_v21 }
 0x284   :  { %2891 = vmatprep.mubr.bf16.mxu0 %v2593_v23 }
 0x285   :  { %2892 = vmatmul.mubr.bf16.vlgmr.msra.gmra.mxu0 %v2592_v24 }
 0x2bb   :  { %v2581_v7 = vpop.f32.mrf.mxu1 }
 0x2bc   :  { %v2582_v28 = vadd.f32 %v2581_v7, %v2541_v25 }
 0x2bd   :  { %v2583_v29 = vpop.f32.mrf.mxu1 }
 0x2be   :  { %v2584_v30 = vadd.f32 %v2583_v29, %v2543_v27  ;;  %v2590_v31 = vmax.f32 %v2582_v28, 0.0 }
 0x2bf   :  { %v2585_v14 = vpop.f32.mrf.mxu1 }
 0x2c0   :  { %v2591_v32 = vmax.f32 %v2584_v30, 0.0  ;;  %v2594_v38 = vpack.c.bf16 %v2590_v31, %v2590_v31 }
 0x2c1   :  { %v2586_v51 = vpop.f32.mrf.mxu1 }
 0x2c2   :  { %v2595_v34 = vpack.c.bf16 %v2591_v32, %v2591_v32 }
 0x2c4   :  { %2931 = vmatprep.mubr.bf16.mxu1 %v2595_v34 }
 0x2c5   :  { %2932 = vmatmul.mubr.bf16.vlgmr.msra.gmra.mxu1 %v2594_v38 }
 0x345   :  { %v3328_v39 = vpop.f32.mrf.mxu0 }
 0x347   :  { %v3329_v33 = vpop.f32.mrf.mxu0 }
 0x348   :  { %v3330_v35 = vadd.f32 %v3329_v33, %v3328_v39 }
 0x349   :  { %v3331_v26 = vpop.f32.mrf.mxu0 }
 0x34a   :  { %v2894_v43 = vadd.f32 %v3330_v35, %v3279_v13 }
 0x34b   :  { %v3332_v40 = vpop.f32.mrf.mxu0 }
 0x385   :  { %v3350_v41 = vpop.f32.mrf.mxu1 }
 0x387   :  { %v3351_v42 = vpop.f32.mrf.mxu1 }
 0x388   :  { %v3352_v44 = vadd.f32 %v3351_v42, %v3350_v41 }
 0x389   :  { %v3353_v45 = vpop.f32.mrf.mxu1 }
 0x38a   :  { %v2934_v46 = vadd.f32 %v3352_v44, %v2894_v43 }
 0x38b   :  { %v3354_v47 = vpop.f32.mrf.mxu1 }
 0x38c   :  { %2939 = vst [vmem:[%s4121_s7] sm:$0xff] %v2934_v46 }
 0x38d   :  { %2944 = vsyncpa [#allocation3], 1 }
 0x38e   :  { %2945 = vsyncpa [#allocation5], 1 }

</bundles_post_ra>
